<compile_context>
chip_gen: v6e
topology: v6e:2x2x1
jax: 0.10.0
libtpu: 0.0.40
codegen_flags: <defaults>
</compile_context>

<pallas_src>
import jax
import jax.numpy as jnp
import numpy as np
from jax.experimental import pallas as pl
from jax.experimental.pallas import tpu as pltpu


# ----------------------------- fused Pallas kernel -----------------------------

def _simple_cnn_kernel(x_ref, w1_ref, b1_ref, w2_ref, b2_ref,
                       wfc1_ref, bfc1_ref, wfc2_ref, bfc2_ref,
                       out_ref, xp1_ref, xp2_ref):
    B = x_ref.shape[0]          # batch tile
    f32 = jnp.float32

    # ---- H-padded conv1 input: zero only the two halo rows, store the interior ----
    xp1_ref[:, 0, :] = jnp.zeros((B, 48), f32)
    xp1_ref[:, 17, :] = jnp.zeros((B, 48), f32)
    xp1_ref[:, 1:17, :] = x_ref[...]                               # lanes = (w, cin)

    # ---- conv1: 3 banded matmuls (M=B*16, K=48, N=256) + bias + ReLU --------------
    # Band weight w1_ref[kh] already contains all 3 kw taps and the W zero-padding;
    # output lane = blockpos(w)*16 + cout with even-w blocks in lanes [0,128).
    acc1 = jnp.zeros((B * 16, 256), f32)
    for kh in range(3):
        acc1 = acc1 + jnp.dot(xp1_ref[:, kh:kh + 16, :].reshape(B * 16, 48),
                              w1_ref[kh], preferred_element_type=f32)
    a1 = jnp.maximum(acc1 + b1_ref[...], 0.0)                      # rows = (b, h)

    # ---- pool1: H = row-pair max, W = lane-half max (free via column permutation) --
    v1 = a1.reshape(B * 8, 2, 256)
    p1h = jnp.maximum(v1[:, 0, :], v1[:, 1, :])                    # (B*8, 256)
    p1 = jnp.maximum(p1h[:, :128], p1h[:, 128:])                   # (B*8, 128) lanes=(w,c)

    # ---- H-padded conv2 input ----
    xp2_ref[:, 0, :] = jnp.zeros((B, 128), f32)
    xp2_ref[:, 9, :] = jnp.zeros((B, 128), f32)
    xp2_ref[:, 1:9, :] = p1.reshape(B, 8, 128)

    # ---- conv2: 3 banded matmuls (M=B*8, K=128, N=256) + bias + ReLU --------------
    acc2 = jnp.zeros((B * 8, 256), f32)
    for kh in range(3):
        acc2 = acc2 + jnp.dot(xp2_ref[:, kh:kh + 8, :].reshape(B * 8, 128),
                              w2_ref[kh], preferred_element_type=f32)
    a2 = jnp.maximum(acc2 + b2_ref[...], 0.0)

    # ---- pool2: same structure as pool1 ----
    v2 = a2.reshape(B * 4, 2, 256)
    p2h = jnp.maximum(v2[:, 0, :], v2[:, 1, :])                    # (B*4, 256)
    p2 = jnp.maximum(p2h[:, :128], p2h[:, 128:]).reshape(B, 4, 128)

    # ---- fc1: 4 lane-dense (B,128)@(128,128) matmuls (one per pooled row) + ReLU ---
    accf = jnp.zeros((B, 128), f32)
    for hp in range(4):
        accf = accf + jnp.dot(p2[:, hp, :], wfc1_ref[hp], preferred_element_type=f32)
    h3 = jnp.maximum(accf + bfc1_ref[...], 0.0)

    # ---- fc2 ----
    out_ref[...] = jnp.dot(h3, wfc2_ref[...], preferred_element_type=f32) + bfc2_ref[...]


# ----------------------------- wrapper -----------------------------

def simple_cnn_forward(kparams, x_nchw):
    """x_nchw: (B, 3, 16, 16) float32; kparams: kernel-layout params from prepare_params."""
    x = jnp.transpose(x_nchw, (0, 2, 3, 1)).astype(jnp.float32)    # NCHW -> NHWC
    B = x.shape[0]
    x2d = x.reshape(B, 16, 48)                                     # lanes = (w, cin)

    TB = B if B <= 128 else 128                                    # batch tile per grid step
    Bp = ((B + TB - 1) // TB) * TB
    if Bp != B:
        x2d = jnp.pad(x2d, ((0, Bp - B), (0, 0), (0, 0)))

    out = pl.pallas_call(
        _simple_cnn_kernel,
        out_shape=jax.ShapeDtypeStruct((Bp, 4), jnp.float32),
        grid_spec=pltpu.PrefetchScalarGridSpec(
            num_scalar_prefetch=0,
            grid=(Bp // TB,),
            in_specs=[
                pl.BlockSpec((TB, 16, 48), lambda i: (i, 0, 0)),        # input (batch-tiled)
                pl.BlockSpec((3, 48, 256), lambda i: (0, 0, 0)),        # conv1 band weights (resident)
                pl.BlockSpec((1, 256), lambda i: (0, 0)),               # conv1 bias (tiled per w block)
                pl.BlockSpec((3, 128, 256), lambda i: (0, 0, 0)),       # conv2 band weights
                pl.BlockSpec((1, 256), lambda i: (0, 0)),               # conv2 bias
                pl.BlockSpec((4, 128, 128), lambda i: (0, 0, 0)),       # fc1 per-row blocks
                pl.BlockSpec((1, 128), lambda i: (0, 0)),               # fc1 bias
                pl.BlockSpec((128, 4), lambda i: (0, 0)),               # fc2 weight
                pl.BlockSpec((1, 4), lambda i: (0, 0)),                 # fc2 bias
            ],
            out_specs=pl.BlockSpec((TB, 4), lambda i: (i, 0)),
            scratch_shapes=[
                pltpu.VMEM((TB, 18, 48), jnp.float32),     # H-padded conv1 input
                pltpu.VMEM((TB, 10, 128), jnp.float32),    # H-padded conv2 input
            ],
        ),
        compiler_params=pltpu.CompilerParams(
            dimension_semantics=("parallel",)),
    )(x2d, kparams["w1"], kparams["b1"], kparams["w2"], kparams["b2"],
      kparams["wfc1"], kparams["bfc1"], kparams["wfc2"], kparams["bfc2"])
    return out[:B]


# ----------------------------- parameters -----------------------------

def init_params(key):
    """PyTorch-layout params with PyTorch's default uniform(-1/sqrt(fan_in), +...) init."""
    ks = jax.random.split(key, 8)

    def u(k, shape, fan_in):
        bound = 1.0 / jnp.sqrt(jnp.float32(fan_in))
        return jax.random.uniform(k, shape, jnp.float32, -bound, bound)

    return {
        "conv1_w": u(ks[0], (16, 3, 3, 3), 27),      # OIHW
        "conv1_b": u(ks[1], (16,), 27),
        "conv2_w": u(ks[2], (32, 16, 3, 3), 144),    # OIHW
        "conv2_b": u(ks[3], (32,), 144),
        "fc1_w":   u(ks[4], (128, 512), 512),        # (out, in), in = (C,H,W) flatten
        "fc1_b":   u(ks[5], (128,), 512),
        "fc2_w":   u(ks[6], (4, 128), 128),
        "fc2_b":   u(ks[7], (4,), 128),
    }


def prepare_params(p):
    """One-time repack of PyTorch-layout params into banded kernel layouts (no runtime cost).

    Band matrices fold the kw taps and the W zero-padding of each 3x3 conv into the
    weight; output columns are permuted so that even-w output blocks occupy lanes
    [0, N/2) and odd-w blocks occupy [N/2, N), making pool-W a lane-half max.
    """
    w1 = np.asarray(p["conv1_w"], np.float32)        # (16, 3, 3, 3)  OIHW
    w2 = np.asarray(p["conv2_w"], np.float32)        # (32, 16, 3, 3) OIHW
    fc1 = np.asarray(p["fc1_w"], np.float32)         # (128, 512), cols in (C,H,W) order
    fc2 = np.asarray(p["fc2_w"], np.float32)         # (4, 128)

    # conv1 band: (kh, w_in*3+ci, blockpos(w_out)*16+co)
    band1 = np.zeros((3, 48, 256), np.float32)
    for kh in range(3):
        for w_out in range(16):
            pos = (w_out % 2) * 8 + w_out // 2       # even w -> [0,8), odd w -> [8,16)
            for kw in range(3):
                w_in = w_out + kw - 1
                if 0 <= w_in < 16:
                    band1[kh, w_in * 3:(w_in + 1) * 3, pos * 16:(pos + 1) * 16] = \
                        w1[:, :, kh, kw].T           # (ci, co)

    # conv2 band: (kh, w_in*16+ci, blockpos(w_out)*32+co)
    band2 = np.zeros((3, 128, 256), np.float32)
    for kh in range(3):
        for w_out in range(8):
            pos = (w_out % 2) * 4 + w_out // 2       # even w -> [0,4), odd w -> [4,8)
            for kw in range(3):
                w_in = w_out + kw - 1
                if 0 <= w_in < 8:
                    band2[kh, w_in * 16:(w_in + 1) * 16, pos * 32:(pos + 1) * 32] = \
                        w2[:, :, kh, kw].T           # (ci, co)

    # fc1: block hp has rows indexed by (wp*32 + co), columns = 128 outputs.
    # Source feature (PyTorch NCHW flatten) index = co*16 + hp*4 + wp.
    wfc1 = np.transpose(fc1.reshape(128, 32, 4, 4), (2, 3, 1, 0)).reshape(4, 128, 128)

    return {
        "w1": jnp.asarray(band1),
        "b1": jnp.asarray(np.tile(np.asarray(p["conv1_b"], np.float32), 16).reshape(1, 256)),
        "w2": jnp.asarray(band2),
        "b2": jnp.asarray(np.tile(np.asarray(p["conv2_b"], np.float32), 8).reshape(1, 256)),
        "wfc1": jnp.asarray(wfc1),
        "bfc1": jnp.asarray(np.asarray(p["fc1_b"], np.float32).reshape(1, 128)),
        "wfc2": jnp.asarray(fc2.T),
        "bfc2": jnp.asarray(np.asarray(p["fc2_b"], np.float32).reshape(1, 4)),
    }


# --------------------- pure-JAX reference (PyTorch semantics) ---------------------

def _reference_forward(p, x):
    prec = jax.lax.Precision.HIGHEST
    y = jax.lax.conv_general_dilated(x, p["conv1_w"], (1, 1), ((1, 1), (1, 1)),
                                     dimension_numbers=("NCHW", "OIHW", "NCHW"), precision=prec)
    y = jnp.maximum(y + p["conv1_b"][None, :, None, None], 0.0)
    y = jax.lax.reduce_window(y, -jnp.inf, jax.lax.max, (1, 1, 2, 2), (1, 1, 2, 2), "VALID")
    y = jax.lax.conv_general_dilated(y, p["conv2_w"], (1, 1), ((1, 1), (1, 1)),
                                     dimension_numbers=("NCHW", "OIHW", "NCHW"), precision=prec)
    y = jnp.maximum(y + p["conv2_b"][None, :, None, None], 0.0)
    y = jax.lax.reduce_window(y, -jnp.inf, jax.lax.max, (1, 1, 2, 2), (1, 1, 2, 2), "VALID")
    y = y.reshape(y.shape[0], -1)                                  # NCHW flatten -> (B, 512)
    y = jnp.maximum(jnp.dot(y, p["fc1_w"].T, precision=prec) + p["fc1_b"], 0.0)
    return jnp.dot(y, p["fc2_w"].T, precision=prec) + p["fc2_b"]


if __name__ == "__main__":
    key = jax.random.PRNGKey(0)
    kx, kp = jax.random.split(key)
    # input matches nn.Conv2d(in_channels=3) and fc1 = Linear(32*4*4, ...)  =>  (B, 3, 16, 16)
    x = jax.random.normal(kx, (2, 3, 16, 16), dtype=jnp.float32)
    torch_params = init_params(kp)
    kparams = prepare_params(torch_params)

    fwd = jax.jit(simple_cnn_forward)
    out = fwd(kparams, x)
    jax.block_until_ready(out)

    assert out.shape == (2, 4), out.shape
    assert out.dtype == jnp.float32

    ref = _reference_forward(torch_params, x)
    err = float(jnp.max(jnp.abs(out - ref)))
    # Default (MXU-native) matmul precision in the kernel vs HIGHEST in the reference.
    assert err < 2e-2, f"max abs err {err}"

    print("KERNEL_OK")
</pallas_src>

<mosaic_0001>
module attributes {stable_mosaic.version = 11 : i64} {
  func.func @_simple_cnn_kernel(%arg0: i32, %arg1: memref<2x16x48xf32, #tpu.memory_space<vmem>>, %arg2: memref<3x48x256xf32, #tpu.memory_space<vmem>>, %arg3: memref<1x256xf32, #tpu.memory_space<vmem>>, %arg4: memref<3x128x256xf32, #tpu.memory_space<vmem>>, %arg5: memref<1x256xf32, #tpu.memory_space<vmem>>, %arg6: memref<4x128x128xf32, #tpu.memory_space<vmem>>, %arg7: memref<1x128xf32, #tpu.memory_space<vmem>>, %arg8: memref<128x4xf32, #tpu.memory_space<vmem>>, %arg9: memref<1x4xf32, #tpu.memory_space<vmem>>, %arg10: memref<2x4xf32, #tpu.memory_space<vmem>>, %arg11: memref<2x18x48xf32, #tpu.memory_space<vmem>>, %arg12: memref<2x10x128xf32, #tpu.memory_space<vmem>>) attributes {dimension_semantics = [#tpu.dimension_semantics<parallel>], iteration_bounds = array<i64: 1>, scalar_prefetch = 0 : i64, scratch_operands = 2 : i64, tpu.core_type = #tpu.core_type<tc>, window_params = [{transform_indices = @transform_0, window_bounds = array<i64: 2, 16, 48>}, {pipeline_mode = #tpu.pipeline_mode<synchronous>, transform_indices = @transform_1, window_bounds = array<i64: 3, 48, 256>}, {pipeline_mode = #tpu.pipeline_mode<synchronous>, transform_indices = @transform_2, window_bounds = array<i64: 1, 256>}, {pipeline_mode = #tpu.pipeline_mode<synchronous>, transform_indices = @transform_3, window_bounds = array<i64: 3, 128, 256>}, {pipeline_mode = #tpu.pipeline_mode<synchronous>, transform_indices = @transform_4, window_bounds = array<i64: 1, 256>}, {pipeline_mode = #tpu.pipeline_mode<synchronous>, transform_indices = @transform_5, window_bounds = array<i64: 4, 128, 128>}, {pipeline_mode = #tpu.pipeline_mode<synchronous>, transform_indices = @transform_6, window_bounds = array<i64: 1, 128>}, {pipeline_mode = #tpu.pipeline_mode<synchronous>, transform_indices = @transform_7, window_bounds = array<i64: 128, 4>}, {pipeline_mode = #tpu.pipeline_mode<synchronous>, transform_indices = @transform_8, window_bounds = array<i64: 1, 4>}, {transform_indices = @transform_9, window_bounds = array<i64: 2, 4>}]} {
    %cst = arith.constant 0.000000e+00 : f32
    %0 = vector.broadcast %cst : f32 to vector<2x48xf32>
    %c0 = arith.constant 0 : index
    %c0_0 = arith.constant 0 : index
    %c0_1 = arith.constant 0 : index
    %1 = vector.load %arg11[%c0, %c0_0, %c0_1] : memref<2x18x48xf32, #tpu.memory_space<vmem>>, vector<2x1x48xf32>
    %2 = vector.shape_cast %1 : vector<2x1x48xf32> to vector<2x48xf32>
    %3 = vector.shape_cast %0 : vector<2x48xf32> to vector<2x1x48xf32>
    tpu.vector_store %arg11[%c0, %c0_0, %c0_1], %3 {strides = array<i32>} : memref<2x18x48xf32, #tpu.memory_space<vmem>>, vector<2x1x48xf32>,
    %cst_2 = arith.constant 0.000000e+00 : f32
    %4 = vector.broadcast %cst_2 : f32 to vector<2x48xf32>
    %c0_3 = arith.constant 0 : index
    %c17 = arith.constant 17 : index
    %c0_4 = arith.constant 0 : index
    %5 = vector.load %arg11[%c0_3, %c17, %c0_4] : memref<2x18x48xf32, #tpu.memory_space<vmem>>, vector<2x1x48xf32>
    %6 = vector.shape_cast %5 : vector<2x1x48xf32> to vector<2x48xf32>
    %7 = vector.shape_cast %4 : vector<2x48xf32> to vector<2x1x48xf32>
    tpu.vector_store %arg11[%c0_3, %c17, %c0_4], %7 {strides = array<i32>} : memref<2x18x48xf32, #tpu.memory_space<vmem>>, vector<2x1x48xf32>,
    %c0_5 = arith.constant 0 : index
    %c0_6 = arith.constant 0 : index
    %c0_7 = arith.constant 0 : index
    %8 = vector.load %arg1[%c0_5, %c0_6, %c0_7] : memref<2x16x48xf32, #tpu.memory_space<vmem>>, vector<2x16x48xf32>
    %c0_8 = arith.constant 0 : index
    %c1 = arith.constant 1 : index
    %c0_9 = arith.constant 0 : index
    %9 = vector.load %arg11[%c0_8, %c1, %c0_9] : memref<2x18x48xf32, #tpu.memory_space<vmem>>, vector<2x16x48xf32>
    tpu.vector_store %arg11[%c0_8, %c1, %c0_9], %8 {strides = array<i32>} : memref<2x18x48xf32, #tpu.memory_space<vmem>>, vector<2x16x48xf32>,
    %cst_10 = arith.constant 0.000000e+00 : f32
    %10 = vector.broadcast %cst_10 : f32 to vector<32x256xf32>
    %c0_11 = arith.constant 0 : index
    %c0_12 = arith.constant 0 : index
    %c0_13 = arith.constant 0 : index
    %11 = vector.load %arg11[%c0_11, %c0_12, %c0_13] : memref<2x18x48xf32, #tpu.memory_space<vmem>>, vector<2x16x48xf32>
    %12 = vector.shape_cast %11 : vector<2x16x48xf32> to vector<32x48xf32>
    %c0_14 = arith.constant 0 : index
    %c0_15 = arith.constant 0 : index
    %c0_16 = arith.constant 0 : index
    %13 = vector.load %arg2[%c0_14, %c0_15, %c0_16] : memref<3x48x256xf32, #tpu.memory_space<vmem>>, vector<1x48x256xf32>
    %14 = vector.shape_cast %13 : vector<1x48x256xf32> to vector<48x256xf32>
    %cst_17 = arith.constant dense<0.000000e+00> : vector<32x256xf32>
    %15 = tpu.matmul %12, %14, %cst_17 {dimension_numbers = #tpu.dot_dimension_numbers<[1], [0], [0], [1], [0, 0, 1, 1], [], []>} : vector<32x48xf32>, vector<48x256xf32>, vector<32x256xf32> -> vector<32x256xf32>
    %16 = arith.addf %10, %15 : vector<32x256xf32>
    %c0_18 = arith.constant 0 : index
    %c1_19 = arith.constant 1 : index
    %c0_20 = arith.constant 0 : index
    %17 = vector.load %arg11[%c0_18, %c1_19, %c0_20] : memref<2x18x48xf32, #tpu.memory_space<vmem>>, vector<2x16x48xf32>
    %18 = vector.shape_cast %17 : vector<2x16x48xf32> to vector<32x48xf32>
    %c1_21 = arith.constant 1 : index
    %c0_22 = arith.constant 0 : index
    %c0_23 = arith.constant 0 : index
    %19 = vector.load %arg2[%c1_21, %c0_22, %c0_23] : memref<3x48x256xf32, #tpu.memory_space<vmem>>, vector<1x48x256xf32>
    %20 = vector.shape_cast %19 : vector<1x48x256xf32> to vector<48x256xf32>
    %cst_24 = arith.constant dense<0.000000e+00> : vector<32x256xf32>
    %21 = tpu.matmul %18, %20, %cst_24 {dimension_numbers = #tpu.dot_dimension_numbers<[1], [0], [0], [1], [0, 0, 1, 1], [], []>} : vector<32x48xf32>, vector<48x256xf32>, vector<32x256xf32> -> vector<32x256xf32>
    %22 = arith.addf %16, %21 : vector<32x256xf32>
    %c0_25 = arith.constant 0 : index
    %c2 = arith.constant 2 : index
    %c0_26 = arith.constant 0 : index
    %23 = vector.load %arg11[%c0_25, %c2, %c0_26] : memref<2x18x48xf32, #tpu.memory_space<vmem>>, vector<2x16x48xf32>
    %24 = vector.shape_cast %23 : vector<2x16x48xf32> to vector<32x48xf32>
    %c2_27 = arith.constant 2 : index
    %c0_28 = arith.constant 0 : index
    %c0_29 = arith.constant 0 : index
    %25 = vector.load %arg2[%c2_27, %c0_28, %c0_29] : memref<3x48x256xf32, #tpu.memory_space<vmem>>, vector<1x48x256xf32>
    %26 = vector.shape_cast %25 : vector<1x48x256xf32> to vector<48x256xf32>
    %cst_30 = arith.constant dense<0.000000e+00> : vector<32x256xf32>
    %27 = tpu.matmul %24, %26, %cst_30 {dimension_numbers = #tpu.dot_dimension_numbers<[1], [0], [0], [1], [0, 0, 1, 1], [], []>} : vector<32x48xf32>, vector<48x256xf32>, vector<32x256xf32> -> vector<32x256xf32>
    %28 = arith.addf %22, %27 : vector<32x256xf32>
    %c0_31 = arith.constant 0 : index
    %c0_32 = arith.constant 0 : index
    %29 = vector.load %arg3[%c0_31, %c0_32] : memref<1x256xf32, #tpu.memory_space<vmem>>, vector<1x256xf32>
    %30 = vector.broadcast %29 : vector<1x256xf32> to vector<32x256xf32>
    %31 = arith.addf %28, %30 : vector<32x256xf32>
    %cst_33 = arith.constant 0.000000e+00 : f32
    %32 = vector.broadcast %cst_33 : f32 to vector<32x256xf32>
    %33 = arith.maximumf %31, %32 : vector<32x256xf32>
    %34 = vector.shape_cast %33 : vector<32x256xf32> to vector<16x2x256xf32>
    %35 = vector.extract_strided_slice %34 {offsets = [0, 0, 0], sizes = [16, 1, 256], strides = [1, 1, 1]} : vector<16x2x256xf32> to vector<16x1x256xf32>
    %36 = vector.shape_cast %35 : vector<16x1x256xf32> to vector<16x256xf32>
    %37 = vector.extract_strided_slice %34 {offsets = [0, 1, 0], sizes = [16, 1, 256], strides = [1, 1, 1]} : vector<16x2x256xf32> to vector<16x1x256xf32>
    %38 = vector.shape_cast %37 : vector<16x1x256xf32> to vector<16x256xf32>
    %39 = arith.maximumf %36, %38 : vector<16x256xf32>
    %40 = vector.extract_strided_slice %39 {offsets = [0, 0], sizes = [16, 128], strides = [1, 1]} : vector<16x256xf32> to vector<16x128xf32>
    %41 = vector.extract_strided_slice %39 {offsets = [0, 128], sizes = [16, 128], strides = [1, 1]} : vector<16x256xf32> to vector<16x128xf32>
    %42 = arith.maximumf %40, %41 : vector<16x128xf32>
    %cst_34 = arith.constant 0.000000e+00 : f32
    %43 = vector.broadcast %cst_34 : f32 to vector<2x128xf32>
    %c0_35 = arith.constant 0 : index
    %c0_36 = arith.constant 0 : index
    %c0_37 = arith.constant 0 : index
    %44 = vector.load %arg12[%c0_35, %c0_36, %c0_37] : memref<2x10x128xf32, #tpu.memory_space<vmem>>, vector<2x1x128xf32>
    %45 = vector.shape_cast %44 : vector<2x1x128xf32> to vector<2x128xf32>
    %46 = vector.shape_cast %43 : vector<2x128xf32> to vector<2x1x128xf32>
    tpu.vector_store %arg12[%c0_35, %c0_36, %c0_37], %46 {strides = array<i32>} : memref<2x10x128xf32, #tpu.memory_space<vmem>>, vector<2x1x128xf32>,
    %cst_38 = arith.constant 0.000000e+00 : f32
    %47 = vector.broadcast %cst_38 : f32 to vector<2x128xf32>
    %c0_39 = arith.constant 0 : index
    %c9 = arith.constant 9 : index
    %c0_40 = arith.constant 0 : index
    %48 = vector.load %arg12[%c0_39, %c9, %c0_40] : memref<2x10x128xf32, #tpu.memory_space<vmem>>, vector<2x1x128xf32>
    %49 = vector.shape_cast %48 : vector<2x1x128xf32> to vector<2x128xf32>
    %50 = vector.shape_cast %47 : vector<2x128xf32> to vector<2x1x128xf32>
    tpu.vector_store %arg12[%c0_39, %c9, %c0_40], %50 {strides = array<i32>} : memref<2x10x128xf32, #tpu.memory_space<vmem>>, vector<2x1x128xf32>,
    %51 = vector.shape_cast %42 : vector<16x128xf32> to vector<2x8x128xf32>
    %c0_41 = arith.constant 0 : index
    %c1_42 = arith.constant 1 : index
    %c0_43 = arith.constant 0 : index
    %52 = vector.load %arg12[%c0_41, %c1_42, %c0_43] : memref<2x10x128xf32, #tpu.memory_space<vmem>>, vector<2x8x128xf32>
    tpu.vector_store %arg12[%c0_41, %c1_42, %c0_43], %51 {strides = array<i32>} : memref<2x10x128xf32, #tpu.memory_space<vmem>>, vector<2x8x128xf32>,
    %cst_44 = arith.constant 0.000000e+00 : f32
    %53 = vector.broadcast %cst_44 : f32 to vector<16x256xf32>
    %c0_45 = arith.constant 0 : index
    %c0_46 = arith.constant 0 : index
    %c0_47 = arith.constant 0 : index
    %54 = vector.load %arg12[%c0_45, %c0_46, %c0_47] : memref<2x10x128xf32, #tpu.memory_space<vmem>>, vector<2x8x128xf32>
    %55 = vector.shape_cast %54 : vector<2x8x128xf32> to vector<16x128xf32>
    %c0_48 = arith.constant 0 : index
    %c0_49 = arith.constant 0 : index
    %c0_50 = arith.constant 0 : index
    %56 = vector.load %arg4[%c0_48, %c0_49, %c0_50] : memref<3x128x256xf32, #tpu.memory_space<vmem>>, vector<1x128x256xf32>
    %57 = vector.shape_cast %56 : vector<1x128x256xf32> to vector<128x256xf32>
    %cst_51 = arith.constant dense<0.000000e+00> : vector<16x256xf32>
    %58 = tpu.matmul %55, %57, %cst_51 {dimension_numbers = #tpu.dot_dimension_numbers<[1], [0], [0], [1], [0, 0, 1, 1], [], []>} : vector<16x128xf32>, vector<128x256xf32>, vector<16x256xf32> -> vector<16x256xf32>
    %59 = arith.addf %53, %58 : vector<16x256xf32>
    %c0_52 = arith.constant 0 : index
    %c1_53 = arith.constant 1 : index
    %c0_54 = arith.constant 0 : index
    %60 = vector.load %arg12[%c0_52, %c1_53, %c0_54] : memref<2x10x128xf32, #tpu.memory_space<vmem>>, vector<2x8x128xf32>
    %61 = vector.shape_cast %60 : vector<2x8x128xf32> to vector<16x128xf32>
    %c1_55 = arith.constant 1 : index
    %c0_56 = arith.constant 0 : index
    %c0_57 = arith.constant 0 : index
    %62 = vector.load %arg4[%c1_55, %c0_56, %c0_57] : memref<3x128x256xf32, #tpu.memory_space<vmem>>, vector<1x128x256xf32>
    %63 = vector.shape_cast %62 : vector<1x128x256xf32> to vector<128x256xf32>
    %cst_58 = arith.constant dense<0.000000e+00> : vector<16x256xf32>
    %64 = tpu.matmul %61, %63, %cst_58 {dimension_numbers = #tpu.dot_dimension_numbers<[1], [0], [0], [1], [0, 0, 1, 1], [], []>} : vector<16x128xf32>, vector<128x256xf32>, vector<16x256xf32> -> vector<16x256xf32>
    %65 = arith.addf %59, %64 : vector<16x256xf32>
    %c0_59 = arith.constant 0 : index
    %c2_60 = arith.constant 2 : index
    %c0_61 = arith.constant 0 : index
    %66 = vector.load %arg12[%c0_59, %c2_60, %c0_61] : memref<2x10x128xf32, #tpu.memory_space<vmem>>, vector<2x8x128xf32>
    %67 = vector.shape_cast %66 : vector<2x8x128xf32> to vector<16x128xf32>
    %c2_62 = arith.constant 2 : index
    %c0_63 = arith.constant 0 : index
    %c0_64 = arith.constant 0 : index
    %68 = vector.load %arg4[%c2_62, %c0_63, %c0_64] : memref<3x128x256xf32, #tpu.memory_space<vmem>>, vector<1x128x256xf32>
    %69 = vector.shape_cast %68 : vector<1x128x256xf32> to vector<128x256xf32>
    %cst_65 = arith.constant dense<0.000000e+00> : vector<16x256xf32>
    %70 = tpu.matmul %67, %69, %cst_65 {dimension_numbers = #tpu.dot_dimension_numbers<[1], [0], [0], [1], [0, 0, 1, 1], [], []>} : vector<16x128xf32>, vector<128x256xf32>, vector<16x256xf32> -> vector<16x256xf32>
    %71 = arith.addf %65, %70 : vector<16x256xf32>
    %c0_66 = arith.constant 0 : index
    %c0_67 = arith.constant 0 : index
    %72 = vector.load %arg5[%c0_66, %c0_67] : memref<1x256xf32, #tpu.memory_space<vmem>>, vector<1x256xf32>
    %73 = vector.broadcast %72 : vector<1x256xf32> to vector<16x256xf32>
    %74 = arith.addf %71, %73 : vector<16x256xf32>
    %cst_68 = arith.constant 0.000000e+00 : f32
    %75 = vector.broadcast %cst_68 : f32 to vector<16x256xf32>
    %76 = arith.maximumf %74, %75 : vector<16x256xf32>
    %77 = vector.shape_cast %76 : vector<16x256xf32> to vector<8x2x256xf32>
    %78 = vector.extract_strided_slice %77 {offsets = [0, 0, 0], sizes = [8, 1, 256], strides = [1, 1, 1]} : vector<8x2x256xf32> to vector<8x1x256xf32>
    %79 = vector.shape_cast %78 : vector<8x1x256xf32> to vector<8x256xf32>
    %80 = vector.extract_strided_slice %77 {offsets = [0, 1, 0], sizes = [8, 1, 256], strides = [1, 1, 1]} : vector<8x2x256xf32> to vector<8x1x256xf32>
    %81 = vector.shape_cast %80 : vector<8x1x256xf32> to vector<8x256xf32>
    %82 = arith.maximumf %79, %81 : vector<8x256xf32>
    %83 = vector.extract_strided_slice %82 {offsets = [0, 0], sizes = [8, 128], strides = [1, 1]} : vector<8x256xf32> to vector<8x128xf32>
    %84 = vector.extract_strided_slice %82 {offsets = [0, 128], sizes = [8, 128], strides = [1, 1]} : vector<8x256xf32> to vector<8x128xf32>
    %85 = arith.maximumf %83, %84 : vector<8x128xf32>
    %86 = vector.shape_cast %85 : vector<8x128xf32> to vector<2x4x128xf32>
    %cst_69 = arith.constant 0.000000e+00 : f32
    %87 = vector.broadcast %cst_69 : f32 to vector<2x128xf32>
    %88 = vector.extract_strided_slice %86 {offsets = [0, 0, 0], sizes = [2, 1, 128], strides = [1, 1, 1]} : vector<2x4x128xf32> to vector<2x1x128xf32>
    %89 = vector.shape_cast %88 : vector<2x1x128xf32> to vector<2x128xf32>
    %c0_70 = arith.constant 0 : index
    %c0_71 = arith.constant 0 : index
    %c0_72 = arith.constant 0 : index
    %90 = vector.load %arg6[%c0_70, %c0_71, %c0_72] : memref<4x128x128xf32, #tpu.memory_space<vmem>>, vector<1x128x128xf32>
    %91 = vector.shape_cast %90 : vector<1x128x128xf32> to vector<128x128xf32>
    %cst_73 = arith.constant dense<0.000000e+00> : vector<2x128xf32>
    %92 = tpu.matmul %89, %91, %cst_73 {dimension_numbers = #tpu.dot_dimension_numbers<[1], [0], [0], [1], [0, 0, 1, 1], [], []>} : vector<2x128xf32>, vector<128x128xf32>, vector<2x128xf32> -> vector<2x128xf32>
    %93 = arith.addf %87, %92 : vector<2x128xf32>
    %94 = vector.extract_strided_slice %86 {offsets = [0, 1, 0], sizes = [2, 1, 128], strides = [1, 1, 1]} : vector<2x4x128xf32> to vector<2x1x128xf32>
    %95 = vector.shape_cast %94 : vector<2x1x128xf32> to vector<2x128xf32>
    %c1_74 = arith.constant 1 : index
    %c0_75 = arith.constant 0 : index
    %c0_76 = arith.constant 0 : index
    %96 = vector.load %arg6[%c1_74, %c0_75, %c0_76] : memref<4x128x128xf32, #tpu.memory_space<vmem>>, vector<1x128x128xf32>
    %97 = vector.shape_cast %96 : vector<1x128x128xf32> to vector<128x128xf32>
    %cst_77 = arith.constant dense<0.000000e+00> : vector<2x128xf32>
    %98 = tpu.matmul %95, %97, %cst_77 {dimension_numbers = #tpu.dot_dimension_numbers<[1], [0], [0], [1], [0, 0, 1, 1], [], []>} : vector<2x128xf32>, vector<128x128xf32>, vector<2x128xf32> -> vector<2x128xf32>
    %99 = arith.addf %93, %98 : vector<2x128xf32>
    %100 = vector.extract_strided_slice %86 {offsets = [0, 2, 0], sizes = [2, 1, 128], strides = [1, 1, 1]} : vector<2x4x128xf32> to vector<2x1x128xf32>
    %101 = vector.shape_cast %100 : vector<2x1x128xf32> to vector<2x128xf32>
    %c2_78 = arith.constant 2 : index
    %c0_79 = arith.constant 0 : index
    %c0_80 = arith.constant 0 : index
    %102 = vector.load %arg6[%c2_78, %c0_79, %c0_80] : memref<4x128x128xf32, #tpu.memory_space<vmem>>, vector<1x128x128xf32>
    %103 = vector.shape_cast %102 : vector<1x128x128xf32> to vector<128x128xf32>
    %cst_81 = arith.constant dense<0.000000e+00> : vector<2x128xf32>
    %104 = tpu.matmul %101, %103, %cst_81 {dimension_numbers = #tpu.dot_dimension_numbers<[1], [0], [0], [1], [0, 0, 1, 1], [], []>} : vector<2x128xf32>, vector<128x128xf32>, vector<2x128xf32> -> vector<2x128xf32>
    %105 = arith.addf %99, %104 : vector<2x128xf32>
    %106 = vector.extract_strided_slice %86 {offsets = [0, 3, 0], sizes = [2, 1, 128], strides = [1, 1, 1]} : vector<2x4x128xf32> to vector<2x1x128xf32>
    %107 = vector.shape_cast %106 : vector<2x1x128xf32> to vector<2x128xf32>
    %c3 = arith.constant 3 : index
    %c0_82 = arith.constant 0 : index
    %c0_83 = arith.constant 0 : index
    %108 = vector.load %arg6[%c3, %c0_82, %c0_83] : memref<4x128x128xf32, #tpu.memory_space<vmem>>, vector<1x128x128xf32>
    %109 = vector.shape_cast %108 : vector<1x128x128xf32> to vector<128x128xf32>
    %cst_84 = arith.constant dense<0.000000e+00> : vector<2x128xf32>
    %110 = tpu.matmul %107, %109, %cst_84 {dimension_numbers = #tpu.dot_dimension_numbers<[1], [0], [0], [1], [0, 0, 1, 1], [], []>} : vector<2x128xf32>, vector<128x128xf32>, vector<2x128xf32> -> vector<2x128xf32>
    %111 = arith.addf %105, %110 : vector<2x128xf32>
    %c0_85 = arith.constant 0 : index
    %c0_86 = arith.constant 0 : index
    %112 = vector.load %arg7[%c0_85, %c0_86] : memref<1x128xf32, #tpu.memory_space<vmem>>, vector<1x128xf32>
    %113 = vector.broadcast %112 : vector<1x128xf32> to vector<2x128xf32>
    %114 = arith.addf %111, %113 : vector<2x128xf32>
    %cst_87 = arith.constant 0.000000e+00 : f32
    %115 = vector.broadcast %cst_87 : f32 to vector<2x128xf32>
    %116 = arith.maximumf %114, %115 : vector<2x128xf32>
    %c0_88 = arith.constant 0 : index
    %c0_89 = arith.constant 0 : index
    %117 = vector.load %arg8[%c0_88, %c0_89] : memref<128x4xf32, #tpu.memory_space<vmem>>, vector<128x4xf32>
    %cst_90 = arith.constant dense<0.000000e+00> : vector<2x4xf32>
    %118 = tpu.matmul %116, %117, %cst_90 {dimension_numbers = #tpu.dot_dimension_numbers<[1], [0], [0], [1], [0, 0, 1, 1], [], []>} : vector<2x128xf32>, vector<128x4xf32>, vector<2x4xf32> -> vector<2x4xf32>
    %c0_91 = arith.constant 0 : index
    %c0_92 = arith.constant 0 : index
    %119 = vector.load %arg9[%c0_91, %c0_92] : memref<1x4xf32, #tpu.memory_space<vmem>>, vector<1x4xf32>
    %120 = vector.broadcast %119 : vector<1x4xf32> to vector<2x4xf32>
    %121 = arith.addf %118, %120 : vector<2x4xf32>
    %c0_93 = arith.constant 0 : index
    %c0_94 = arith.constant 0 : index
    %122 = vector.load %arg10[%c0_93, %c0_94] : memref<2x4xf32, #tpu.memory_space<vmem>>, vector<2x4xf32>
    tpu.vector_store %arg10[%c0_93, %c0_94], %121 {strides = array<i32>} : memref<2x4xf32, #tpu.memory_space<vmem>>, vector<2x4xf32>,
    return
  }
  func.func @transform_0(%arg0: i32) -> (i32, i32, i32) {
    %c0_i32 = arith.constant 0 : i32
    %c0_i32_0 = arith.constant 0 : i32
    %c0_i32_1 = arith.constant 0 : i32
    return %arg0, %c0_i32, %c0_i32_0 : i32, i32, i32
  }
  func.func @transform_1(%arg0: i32) -> (i32, i32, i32) {
    %c0_i32 = arith.constant 0 : i32
    %c0_i32_0 = arith.constant 0 : i32
    %c0_i32_1 = arith.constant 0 : i32
    %c0_i32_2 = arith.constant 0 : i32
    return %c0_i32, %c0_i32_0, %c0_i32_1 : i32, i32, i32
  }
  func.func @transform_2(%arg0: i32) -> (i32, i32) {
    %c0_i32 = arith.constant 0 : i32
    %c0_i32_0 = arith.constant 0 : i32
    %c0_i32_1 = arith.constant 0 : i32
    return %c0_i32, %c0_i32_0 : i32, i32
  }
  func.func @transform_3(%arg0: i32) -> (i32, i32, i32) {
    %c0_i32 = arith.constant 0 : i32
    %c0_i32_0 = arith.constant 0 : i32
    %c0_i32_1 = arith.constant 0 : i32
    %c0_i32_2 = arith.constant 0 : i32
    return %c0_i32, %c0_i32_0, %c0_i32_1 : i32, i32, i32
  }
  func.func @transform_4(%arg0: i32) -> (i32, i32) {
    %c0_i32 = arith.constant 0 : i32
    %c0_i32_0 = arith.constant 0 : i32
    %c0_i32_1 = arith.constant 0 : i32
    return %c0_i32, %c0_i32_0 : i32, i32
  }
  func.func @transform_5(%arg0: i32) -> (i32, i32, i32) {
    %c0_i32 = arith.constant 0 : i32
    %c0_i32_0 = arith.constant 0 : i32
    %c0_i32_1 = arith.constant 0 : i32
    %c0_i32_2 = arith.constant 0 : i32
    return %c0_i32, %c0_i32_0, %c0_i32_1 : i32, i32, i32
  }
  func.func @transform_6(%arg0: i32) -> (i32, i32) {
    %c0_i32 = arith.constant 0 : i32
    %c0_i32_0 = arith.constant 0 : i32
    %c0_i32_1 = arith.constant 0 : i32
    return %c0_i32, %c0_i32_0 : i32, i32
  }
  func.func @transform_7(%arg0: i32) -> (i32, i32) {
    %c0_i32 = arith.constant 0 : i32
    %c0_i32_0 = arith.constant 0 : i32
    %c0_i32_1 = arith.constant 0 : i32
    return %c0_i32, %c0_i32_0 : i32, i32
  }
  func.func @transform_8(%arg0: i32) -> (i32, i32) {
    %c0_i32 = arith.constant 0 : i32
    %c0_i32_0 = arith.constant 0 : i32
    %c0_i32_1 = arith.constant 0 : i32
    return %c0_i32, %c0_i32_0 : i32, i32
  }
  func.func @transform_9(%arg0: i32) -> (i32, i32) {
    %c0_i32 = arith.constant 0 : i32
    %c0_i32_0 = arith.constant 0 : i32
    return %arg0, %c0_i32 : i32, i32
  }
}

</mosaic_0001>

<bundles_post_ra>
// kernel: simple_cnn_forward.1
= control target key start
LH: loop header
LB: loop body
LE: loop exit
PB: predicated region body
PF: predicated region fallthrough
CT: control target
= control target key end

     0   :  { %14 = vsyncpa [#allocation5], 0  ;;  %s2660_s0 = inlined_call_operand.vmem [shape: f32[2,16,48], index: 0, kind: input, shape index: {}]   ;;  %s2661_s1 = inlined_call_operand.vmem [shape: f32[3,48,256], index: 1, kind: input, shape index: {}]   ;;  %s2662_s2 = inlined_call_operand.vmem [shape: f32[1,256], index: 2, kind: input, shape index: {}]   ;;  %s2663_s3 = inlined_call_operand.hbm [shape: f32[3,128,256], index: 3, kind: input, shape index: {}]   ;;  %s2664_s4 = inlined_call_operand.vmem [shape: f32[1,256], index: 4, kind: input, shape index: {}]   ;;  %s2665_s5 = inlined_call_operand.hbm [shape: f32[4,128,128], index: 5, kind: input, shape index: {}]   ;;  %s2666_s6 = inlined_call_operand.vmem [shape: f32[1,128], index: 6, kind: input, shape index: {}]   ;;  %s2667_s7 = inlined_call_operand.vmem [shape: f32[128,4], index: 7, kind: input, shape index: {}]   ;;  %s2668_s8 = inlined_call_operand.vmem [shape: f32[1,4], index: 8, kind: input, shape index: {}]   ;;  %s2669_s9 = inlined_call_operand.hbm [shape: f32[2,4], index: 9, kind: output, shape index: {}]  }
   0x1   :  { %15 = vsyncpa [#allocation8], 0 }
   0x2   :  { %16 = vsyncpa [#allocation6], 0  ;;  %s2195_s30 = smov [#allocation4]  }
   0x3   :  { %s28_s10 = sshll.u32 %s2195_s30, 4  ;;  %s29_s10 = int_to_ptr.vmem [resolvable:$true] %s28_s10 }
   0x4   :  { %s2137_s11 = scalar_lea.vmem %s29_s10, 12288  ;;  %p2142_p1 = scmp.lt.s32.totalorder %s29_s10, %s29_s10 }
   0x5   :  { %p2138_p0 = scmp.ne.s32.totalorder %s29_s10, %s2137_s11  ;;  %p2143_p2 = scmp.lt.s32.totalorder %s2137_s11, %s2137_s11 }
   0x7   :  { %p2144_p3 = por %p2143_p2, %p2142_p1 }
   0x9   :  { %p2145_p4 = pnand %p2144_p3, %p2138_p0 }
   0xb   :  { %2148 = shalt.err (!%p2145_p4)
}
   0xc   :  { %s2196_s12 = smov 256   ;;  %s2197_s13 = smov 16  }
   0xd   :  { %34 = dma.hbm_to_vmem [thread:$0]  %s2663_s3, 12288, %s29_s10, [#allocation5], %s2196_s12, %s2196_s12, %s2197_s13  }
   0xe   :  { %s2198_s16 = smov [#allocation7]  }
   0xf   :  { %s42_s17 = sshll.u32 %s2198_s16, 4  ;;  %s43_s17 = int_to_ptr.vmem [resolvable:$true] %s42_s17 }
  0x10   :  { %s2157_s18 = scalar_lea.vmem %s43_s17, 8192  ;;  %p2162_p6 = scmp.lt.s32.totalorder %s43_s17, %s43_s17 }
  0x11   :  { %p2158_p5 = scmp.ne.s32.totalorder %s43_s17, %s2157_s18  ;;  %p2163_p7 = scmp.lt.s32.totalorder %s2157_s18, %s2157_s18 }
  0x13   :  { %p2164_p8 = por %p2163_p7, %p2162_p6 }
  0x15   :  { %p2165_p9 = pnand %p2164_p8, %p2158_p5 }
  0x17   :  { %2168 = shalt.err (!%p2165_p9)
}
  0x18   :  { %s2199_s19 = smov 128   ;;  %s2200_s20 = smov 8  }
  0x19   :  { %48 = dma.hbm_to_vmem [thread:$0]  %s2665_s5, 8192, %s43_s17, [#allocation8], %s2199_s19, %s2199_s19, %s2200_s20  }
  0x1a   :  { %2189 = dma.done.wait [#allocation5], 12288  }
  0x1b   :  { %2190 = vsyncadd [#allocation5], 4294955008 }
  0x1c   :  { %2191 = dma.done.wait [#allocation8], 8192  }
  0x1d   :  { %2192 = vsyncadd [#allocation8], 4294959104  ;;  %vm61_vm0 = vcmask 385024   ;;  %v2201_v0 = vmov 0.0   ;;  %v1796_v1 = vld [vmem:[%s2661_s1 + $0xb8] sm:$0xff]  ;;  %v1795_v2 = vld [vmem:[%s2661_s1 + $0xb0] sm:$0xff] }
  0x1e   :  { %184 = vmatprep.mubr.f32.mxu0 %v2201_v0  ;;  %688 = vst [vmem:[#allocation3] sm:$0x1] %v2201_v0  ;;  %689 = vst [vmem:[#allocation3 + $0x10] sm:$0x1] %v2201_v0  ;;  %202 = vmatprep.mubr.f32.mxu1 %v2201_v0  ;;  %v1794_v3 = vld [vmem:[%s2661_s1 + $0xa8] sm:$0xff]  ;;  %v1793_v4 = vld [vmem:[%s2661_s1 + $0xa0] sm:$0xff] }
  0x1f   :  { %690 = vst [vmem:[#allocation3 + $0x9] sm:$0x1] %v2201_v0  ;;  %691 = vst [vmem:[#allocation3 + $0x19] sm:$0x1] %v2201_v0  ;;  %140 = vmatprep.subr.mxu0 %v1796_v1  ;;  %2107 = vmatprep.subr.mxu1 %v1796_v1  ;;  %v1792_v5 = vld [vmem:[%s2661_s1 + $0x98] sm:$0xff]  ;;  %vm70_vm1 = vcmask 392192  }
  0x20   :  { %62 = vst.msk [vmem:[#allocation2] sm:$0x1] %vm61_vm0, %v2201_v0  ;;  %63 = vst.msk [vmem:[#allocation2 + $0x18] sm:$0x1] %vm61_vm0, %v2201_v0  ;;  %141 = vmatpush1.msra.mxu0 %v1795_v2  ;;  %2113 = vmatpush1.msra.mxu1 %v1795_v2  ;;  %v1791_v6 = vld [vmem:[%s2661_s1 + $0x90] sm:$0xff]  ;;  %v1790_v7 = vld [vmem:[%s2661_s1 + $0x88] sm:$0xff] }
  0x21   :  { %64 = vst.msk [vmem:[#allocation2 + $0x11] sm:$0x1] %vm61_vm0, %v2201_v0  ;;  %65 = vst.msk [vmem:[#allocation2 + $0x29] sm:$0x1] %vm61_vm0, %v2201_v0  ;;  %142 = vmatprep.subr.mxu0 %v1794_v3  ;;  %2108 = vmatprep.subr.mxu1 %v1794_v3  ;;  %v66_v8 = vld [vmem:[%s2660_s0] sm:$0xff]  ;;  %v69_v9 = vld [vmem:[%s2660_s0 + $0x18] sm:$0xff] }
  0x22   :  { %143 = vmatpush1.msra.mxu0 %v1793_v4  ;;  %2114 = vmatpush1.msra.mxu1 %v1793_v4  ;;  %v1789_v10 = vld [vmem:[%s2661_s1 + $0x80] sm:$0xff]  ;;  %71 = vst.msk [vmem:[#allocation2 + $0x1] sm:$0xff] %vm70_vm1, %v66_v8  ;;  %74 = vst.msk [vmem:[#allocation2 + $0x21] sm:$0xff] %vm70_vm1, %v69_v9  ;;  %v1788_v11 = vld [vmem:[%s2661_s1 + $0x78] sm:$0xff]  ;;  %vm772_vm2 = vcmask 1041409   ;;  %vm774_vm3 = vcmask 1042434  }
  0x23   :  { %144 = vmatprep.subr.mxu0 %v1792_v5  ;;  %2109 = vmatprep.subr.mxu1 %v1792_v5  ;;  %v1787_v12 = vld [vmem:[%s2661_s1 + $0x70] sm:$0xff]  ;;  %v67_v13 = vld [vmem:[%s2660_s0 + $0x8] sm:$0xff]  ;;  %v1785_v15 = vld [vmem:[%s2661_s1 + $0x60] sm:$0xff]  ;;  %vm776_vm4 = vcmask 1043459   ;;  %vm778_vm5 = vcmask 1044484   ;;  %vm780_vm6 = vcmask 1045509  }
  0x24   :  { %145 = vmatpush1.msra.mxu0 %v1791_v6  ;;  %2115 = vmatpush1.msra.mxu1 %v1791_v6  ;;  %v1786_v14 = vld [vmem:[%s2661_s1 + $0x68] sm:$0xff]  ;;  %72 = vst.msk [vmem:[#allocation2 + $0x9] sm:$0xff] %vm70_vm1, %v67_v13  ;;  %v68_v16 = vld [vmem:[%s2660_s0 + $0x10] sm:$0xff]  ;;  %v90_v17 = vld [vmem:[%s2661_s1 + $0x58] sm:$0xff]  ;;  %vm782_vm7 = vcmask 1046534   ;;  %vm784_vm8 = vcmask 1047559  }
  0x25   :  { %146 = vmatprep.subr.mxu0 %v1790_v7  ;;  %2110 = vmatprep.subr.mxu1 %v1790_v7  ;;  %v1816_v18 = vld [vmem:[%s2661_s1 + $0x118] sm:$0xff]  ;;  %v89_v19 = vld [vmem:[%s2661_s1 + $0x50] sm:$0xff]  ;;  %73 = vst.msk [vmem:[#allocation2 + $0x19] sm:$0xff] %vm70_vm1, %v68_v16  ;;  %v88_v23 = vld [vmem:[%s2661_s1 + $0x48] sm:$0xff]  ;;  %vm2203_vm9 = vmmov 0   ;;  %s2204_s17 = smov [#allocation9]  }
  0x26   :  { %147 = vmatpush1.msra.mxu0 %v1789_v10  ;;  %2116 = vmatpush1.msra.mxu1 %v1789_v10  ;;  %v1815_v22 = vld [vmem:[%s2661_s1 + $0x110] sm:$0xff]  ;;  %v1814_v24 = vld [vmem:[%s2661_s1 + $0x108] sm:$0xff]  ;;  %v87_v25 = vld [vmem:[%s2661_s1 + $0x40] sm:$0xff]  ;;  %s1775_s18 = sshll.u32 %s2204_s17, 4  ;;  %vm1767_vm10 = vcmask 25600   ;;  %s1776_s18 = int_to_ptr.vmem [resolvable:$true] %s1775_s18 }
  0x27   :  { %148 = vmatprep.subr.mxu0 %v1788_v11  ;;  %2111 = vmatprep.subr.mxu1 %v1788_v11  ;;  %v1813_v26 = vld [vmem:[%s2661_s1 + $0x100] sm:$0xff]  ;;  %v86_v27 = vld [vmem:[%s2661_s1 + $0x38] sm:$0xff]  ;;  %v85_v30 = vld [vmem:[%s2661_s1 + $0x30] sm:$0xff]  ;;  %s2169_s19 = scalar_lea.vmem %s1776_s18, 32  ;;  %p2174_p11 = scmp.lt.s32.totalorder %s1776_s18, %s1776_s18 }
  0x28   :  { %149 = vmatpush1.msra.mxu0 %v1787_v12  ;;  %2117 = vmatpush1.msra.mxu1 %v1787_v12  ;;  %v1812_v29 = vld [vmem:[%s2661_s1 + $0xf8] sm:$0xff]  ;;  %v1811_v31 = vld [vmem:[%s2661_s1 + $0xf0] sm:$0xff]  ;;  %v84_v32 = vld [vmem:[%s2661_s1 + $0x28] sm:$0xff]  ;;  %p2170_p10 = scmp.ne.s32.totalorder %s1776_s18, %s2169_s19  ;;  %p2175_p12 = scmp.lt.s32.totalorder %s2169_s19, %s2169_s19 }
  0x29   :  { %150 = vmatprep.subr.mxu0 %v1786_v14  ;;  %2112 = vmatprep.subr.mxu1 %v1786_v14  ;;  %v91_v20 = vld [vmem:[#allocation2 + $0x1] sm:$0xff]  ;;  %v82_v36 = vld [vmem:[%s2661_s1 + $0x18] sm:$0xff]  ;;  %v81_v39 = vld [vmem:[%s2661_s1 + $0x10] sm:$0xff] }
  0x2a   :  { %151 = vmatpush1.msra.mxu0 %v1785_v15  ;;  %2118 = vmatpush1.msra.mxu1 %v1785_v15  ;;  %v94_v21 = vld [vmem:[#allocation2 + $0x21] sm:$0xff]  ;;  %v1808_v38 = vld [vmem:[%s2661_s1 + $0xd8] sm:$0xff]  ;;  %v1807_v40 = vld [vmem:[%s2661_s1 + $0xd0] sm:$0xff]  ;;  %p2176_p13 = por %p2175_p12, %p2174_p11 }
  0x2b   :  { %1797 = vmatmul.mubr.msk.f32.vlgmr.msra.gmra.mxu0 %vm70_vm1, %v91_v20  ;;  %1800 = vmatmul.mubr.msk.f32.vlgmr.msra.gmra.mxu1 %vm70_vm1, %v94_v21  ;;  %v92_v28 = vld [vmem:[#allocation2 + $0x9] sm:$0xff]  ;;  %v83_v34 = vld [vmem:[%s2661_s1 + $0x20] sm:$0xff]  ;;  %v863_v55 = vld [vmem:[#allocation4 + $0x1e8] sm:$0xff] }
  0x2c   :  { %241 = vmatprep.subr.mxu1 %v90_v17  ;;  %359 = vmatprep.subr.mxu0 %v1816_v18  ;;  %v1810_v33 = vld [vmem:[%s2661_s1 + $0xe8] sm:$0xff]  ;;  %v1809_v35 = vld [vmem:[%s2661_s1 + $0xe0] sm:$0xff]  ;;  %v77_v49 = vld [vmem:[#allocation2 + $0x18] sm:$0xff]  ;;  %p2177_p0 = pnand %p2176_p13, %p2170_p10 }
  0x2d   :  { %242 = vmatpush1.msra.mxu1 %v89_v19  ;;  %360 = vmatpush1.msra.mxu0 %v1815_v22  ;;  %v93_v37 = vld [vmem:[#allocation2 + $0x19] sm:$0xff]  ;;  %v80_v41 = vld [vmem:[%s2661_s1 + $0x8] sm:$0xff]  ;;  %v862_v57 = vld [vmem:[#allocation4 + $0x1e0] sm:$0xff] }
  0x2e   :  { %243 = vmatprep.subr.mxu1 %v88_v23  ;;  %361 = vmatprep.subr.mxu0 %v1814_v24  ;;  %v1806_v42 = vld [vmem:[%s2661_s1 + $0xc8] sm:$0xff]  ;;  %v79_v43 = vld [vmem:[%s2661_s1] sm:$0xff]  ;;  %v828_v60 = vld [vmem:[#allocation4 + $0xe8] sm:$0xff] }
  0x2f   :  { %190 = vmatprep.mubr.f32.mxu0 %v2201_v0  ;;  %244 = vmatpush1.msra.mxu1 %v87_v25  ;;  %v1805_v44 = vld [vmem:[%s2661_s1 + $0xc0] sm:$0xff]  ;;  %v76_v47 = vld [vmem:[#allocation2 + $0x8] sm:$0xff]  ;;  %v827_v61 = vld [vmem:[#allocation4 + $0xe0] sm:$0xff] }
  0x30   :  { %362 = vmatpush1.msra.mxu0 %v1813_v26  ;;  %245 = vmatprep.subr.mxu1 %v86_v27  ;;  %v75_v45 = vld [vmem:[#allocation2] sm:$0xff]  ;;  %v311_v48 = vld [vmem:[#allocation2 + $0xa] sm:$0xff]  ;;  %v859_v63 = vld [vmem:[#allocation4 + $0x1c8] sm:$0xff] }
  0x31   :  { %1798 = vmatmul.mubr.msk.f32.gmra.mxu0 %vm70_vm1, %v92_v28  ;;  %363 = vmatprep.subr.mxu0 %v1812_v29  ;;  %v310_v46 = vld [vmem:[#allocation2 + $0x2] sm:$0xff]  ;;  %v312_v50 = vld [vmem:[#allocation2 + $0x1a] sm:$0xff]  ;;  %v858_v1 = vld [vmem:[#allocation4 + $0x1c0] sm:$0xff] }
  0x32   :  { %246 = vmatpush1.msra.mxu1 %v85_v30  ;;  %364 = vmatpush1.msra.mxu0 %v1811_v31  ;;  %v78_v51 = vld [vmem:[#allocation2 + $0x20] sm:$0xff]  ;;  %v865_v53 = vld [vmem:[#allocation4 + $0x1f8] sm:$0xff]  ;;  %v855_v4 = vld [vmem:[#allocation4 + $0x1a8] sm:$0xff] }
  0x33   :  { %247 = vmatprep.subr.mxu1 %v84_v32  ;;  %365 = vmatprep.subr.mxu0 %v1810_v33  ;;  %v313_v52 = vld [vmem:[#allocation2 + $0x22] sm:$0xff]  ;;  %v854_v5 = vld [vmem:[#allocation4 + $0x1a0] sm:$0xff]  ;;  %v851_v10 = vld [vmem:[#allocation4 + $0x188] sm:$0xff] }
  0x34   :  { %196 = vmatprep.mubr.f32.mxu0 %v2201_v0  ;;  %248 = vmatpush1.msra.mxu1 %v83_v34  ;;  %v864_v54 = vld [vmem:[#allocation4 + $0x1f0] sm:$0xff]  ;;  %v830_v56 = vld [vmem:[#allocation4 + $0xf8] sm:$0xff]  ;;  %v824_v11 = vld [vmem:[#allocation4 + $0xc8] sm:$0xff] }
  0x35   :  { %366 = vmatpush1.msra.mxu0 %v1809_v35  ;;  %249 = vmatprep.subr.mxu1 %v82_v36  ;;  %v829_v58 = vld [vmem:[#allocation4 + $0xf0] sm:$0xff]  ;;  %v861_v59 = vld [vmem:[#allocation4 + $0x1d8] sm:$0xff]  ;;  %v850_v12 = vld [vmem:[#allocation4 + $0x180] sm:$0xff] }
  0x36   :  { %1799 = vmatmul.mubr.msk.f32.gmra.mxu0 %vm70_vm1, %v93_v37  ;;  %367 = vmatprep.subr.mxu0 %v1808_v38  ;;  %v860_v62 = vld [vmem:[#allocation4 + $0x1d0] sm:$0xff]  ;;  %v857_v2 = vld [vmem:[#allocation4 + $0x1b8] sm:$0xff]  ;;  %v823_v13 = vld [vmem:[#allocation4 + $0xc0] sm:$0xff] }
  0x37   :  { %250 = vmatpush1.msra.mxu1 %v81_v39  ;;  %368 = vmatpush1.msra.mxu0 %v1807_v40  ;;  %v856_v3 = vld [vmem:[#allocation4 + $0x1b0] sm:$0xff]  ;;  %v826_v6 = vld [vmem:[#allocation4 + $0xd8] sm:$0xff]  ;;  %v847_v18 = vld [vmem:[#allocation4 + $0x168] sm:$0xff] }
  0x38   :  { %251 = vmatprep.subr.mxu1 %v80_v41  ;;  %369 = vmatprep.subr.mxu0 %v1806_v42  ;;  %v853_v7 = vld [vmem:[#allocation4 + $0x198] sm:$0xff]  ;;  %v825_v8 = vld [vmem:[#allocation4 + $0xd0] sm:$0xff]  ;;  %v820_v19 = vld [vmem:[#allocation4 + $0xa8] sm:$0xff] }
  0x39   :  { %252 = vmatpush1.msra.mxu1 %v79_v43  ;;  %285 = vmatprep.mubr.f32.mxu1 %v2201_v0  ;;  %v852_v9 = vld [vmem:[#allocation4 + $0x190] sm:$0xff]  ;;  %v849_v14 = vld [vmem:[#allocation4 + $0x178] sm:$0xff]  ;;  %v846_v20 = vld [vmem:[#allocation4 + $0x160] sm:$0xff] }
  0x3a   :  { %370 = vmatpush1.msra.mxu0 %v1805_v44  ;;  %403 = vmatprep.mubr.f32.mxu0 %v2201_v0  ;;  %v822_v15 = vld [vmem:[#allocation4 + $0xb8] sm:$0xff]  ;;  %v848_v16 = vld [vmem:[#allocation4 + $0x170] sm:$0xff]  ;;  %v819_v21 = vld [vmem:[#allocation4 + $0xa0] sm:$0xff] }
  0x3b   :  { %1801 = vmatmul.mubr.msk.f32.vlgmr.msra.gmra.mxu1 %vm70_vm1, %v75_v45  ;;  %1817 = vmatmul.mubr.msk.f32.vlgmr.msra.gmra.mxu0 %vm70_vm1, %v310_v46  ;;  %v821_v17 = vld [vmem:[#allocation4 + $0xb0] sm:$0xff]  ;;  %v845_v22 = vld [vmem:[#allocation4 + $0x158] sm:$0xff]  ;;  %v843_v26 = vld [vmem:[#allocation4 + $0x148] sm:$0xff] }
  0x3c   :  { %291 = vmatprep.mubr.f32.mxu1 %v2201_v0  ;;  %409 = vmatprep.mubr.f32.mxu0 %v2201_v0  ;;  %v818_v23 = vld [vmem:[#allocation4 + $0x98] sm:$0xff]  ;;  %v844_v24 = vld [vmem:[#allocation4 + $0x150] sm:$0xff]  ;;  %v816_v27 = vld [vmem:[#allocation4 + $0x88] sm:$0xff] }
  0x3d   :  { %866 = vmatprep.subr.mxu1 %v865_v53  ;;  %943 = vmatprep.subr.mxu0 %v830_v56  ;;  %v817_v25 = vld [vmem:[#allocation4 + $0x90] sm:$0xff]  ;;  %v842_v28 = vld [vmem:[#allocation4 + $0x140] sm:$0xff]  ;;  %v841_v30 = vld [vmem:[#allocation4 + $0x138] sm:$0xff] }
  0x3e   :  { %867 = vmatpush1.msra.mxu1 %v864_v54  ;;  %944 = vmatpush1.msra.mxu0 %v829_v58  ;;  %v815_v29 = vld [vmem:[#allocation4 + $0x80] sm:$0xff]  ;;  %v814_v31 = vld [vmem:[#allocation4 + $0x78] sm:$0xff]  ;;  %v840_v32 = vld [vmem:[#allocation4 + $0x130] sm:$0xff] }
  0x3f   :  { %1802 = vmatmul.mubr.msk.f32.gmra.mxu1 %vm70_vm1, %v76_v47  ;;  %1818 = vmatmul.mubr.msk.f32.gmra.mxu0 %vm70_vm1, %v311_v48  ;;  %v813_v33 = vld [vmem:[#allocation4 + $0x70] sm:$0xff]  ;;  %v839_v34 = vld [vmem:[#allocation4 + $0x128] sm:$0xff]  ;;  %v838_v36 = vld [vmem:[#allocation4 + $0x120] sm:$0xff] }
  0x40   :  { %297 = vmatprep.mubr.f32.mxu1 %v2201_v0  ;;  %415 = vmatprep.mubr.f32.mxu0 %v2201_v0  ;;  %v812_v35 = vld [vmem:[#allocation4 + $0x68] sm:$0xff]  ;;  %v811_v37 = vld [vmem:[#allocation4 + $0x60] sm:$0xff]  ;;  %v837_v38 = vld [vmem:[#allocation4 + $0x118] sm:$0xff] }
  0x41   :  { %868 = vmatprep.subr.mxu1 %v863_v55  ;;  %945 = vmatprep.subr.mxu0 %v828_v60  ;;  %v810_v39 = vld [vmem:[#allocation4 + $0x58] sm:$0xff]  ;;  %v836_v40 = vld [vmem:[#allocation4 + $0x110] sm:$0xff]  ;;  %v835_v42 = vld [vmem:[#allocation4 + $0x108] sm:$0xff] }
  0x42   :  { %869 = vmatpush1.msra.mxu1 %v862_v57  ;;  %946 = vmatpush1.msra.mxu0 %v827_v61  ;;  %v809_v41 = vld [vmem:[#allocation4 + $0x50] sm:$0xff]  ;;  %v808_v43 = vld [vmem:[#allocation4 + $0x48] sm:$0xff]  ;;  %v834_v44 = vld [vmem:[#allocation4 + $0x100] sm:$0xff]  ;;  %v438_v57 = vlaneseq }
  0x43   :  { %1803 = vmatmul.mubr.msk.f32.gmra.mxu1 %vm70_vm1, %v77_v49  ;;  %1819 = vmatmul.mubr.msk.f32.gmra.mxu0 %vm70_vm1, %v312_v50  ;;  %v807_v45 = vld [vmem:[#allocation4 + $0x40] sm:$0xff]  ;;  %v1054_v46 = vld [vmem:[#allocation4 + $0x2f8] sm:$0xff]  ;;  %v805_v48 = vld [vmem:[#allocation4 + $0x30] sm:$0xff] }
  0x44   :  { %303 = vmatprep.mubr.f32.mxu1 %v2201_v0  ;;  %421 = vmatprep.mubr.f32.mxu0 %v2201_v0  ;;  %v806_v47 = vld [vmem:[#allocation4 + $0x38] sm:$0xff]  ;;  %v804_v49 = vld [vmem:[#allocation4 + $0x28] sm:$0xff]  ;;  %v803_v50 = vld [vmem:[#allocation4 + $0x20] sm:$0xff]  ;;  %v2420_v60 = vshrl.u32 %v438_v57, 7 }
  0x45   :  { %870 = vmatprep.subr.mxu1 %v861_v59  ;;  %947 = vmatprep.subr.mxu0 %v826_v6  ;;  %v800_v53 = vld [vmem:[#allocation4 + $0x8] sm:$0xff]  ;;  %v799_v54 = vld [vmem:[#allocation4] sm:$0xff] }
  0x46   :  { %871 = vmatpush1.msra.mxu1 %v860_v62  ;;  %948 = vmatpush1.msra.mxu0 %v825_v8 }
  0x47   :  { %1804 = vmatmul.mubr.msk.f32.gmra.mxu1 %vm70_vm1, %v78_v51  ;;  %1820 = vmatmul.mubr.msk.f32.gmra.mxu0 %vm70_vm1, %v313_v52  ;;  %v802_v51 = vld [vmem:[#allocation4 + $0x18] sm:$0xff]  ;;  %v801_v52 = vld [vmem:[#allocation4 + $0x10] sm:$0xff] }
  0x48   :  { %930 = vmatprep.mubr.f32.mxu1 %v2201_v0  ;;  %1007 = vmatprep.mubr.f32.mxu0 %v2201_v0 }
  0x49   :  { %872 = vmatprep.subr.mxu1 %v859_v63  ;;  %949 = vmatprep.subr.mxu0 %v824_v11 }
  0x4a   :  { %873 = vmatpush1.msra.mxu1 %v858_v1  ;;  %950 = vmatpush1.msra.mxu0 %v823_v13  ;;  %v2423_v1 = vsub.s32 0, %v2420_v60 }
  0x4b   :  { %874 = vmatprep.subr.mxu1 %v857_v2  ;;  %951 = vmatprep.subr.mxu0 %v822_v15 }
  0x4c   :  { %875 = vmatpush1.msra.mxu1 %v856_v3  ;;  %952 = vmatpush1.msra.mxu0 %v821_v17  ;;  %v436_v3 = vld [vmem:[%s2662_s2] sm:$0x3] }
  0x4d   :  { %876 = vmatprep.subr.mxu1 %v855_v4  ;;  %953 = vmatprep.subr.mxu0 %v820_v19  ;;  %v444_v4 = vsub.s32 1, %v2420_v60 }
  0x4e   :  { %877 = vmatpush1.msra.mxu1 %v854_v5  ;;  %954 = vmatpush1.msra.mxu0 %v819_v21 }
  0x4f   :  { %878 = vmatprep.subr.mxu1 %v853_v7  ;;  %955 = vmatprep.subr.mxu0 %v818_v23  ;;  %v2202_v7 = vmov 1983009808   ;;  %v2436_v15 = vrot.slane %v436_v3, %v444_v4 }
  0x50   :  { %879 = vmatpush1.msra.mxu1 %v852_v9  ;;  %956 = vmatpush1.msra.mxu0 %v817_v25  ;;  %v475_v8 = vunpack.c.l.s4 %v2202_v7 }
  0x51   :  { %880 = vmatprep.subr.mxu1 %v851_v10  ;;  %957 = vmatprep.subr.mxu0 %v816_v27  ;;  %v2432_v10 = vrot.slane %v436_v3, %v2423_v1 }
  0x52   :  { %881 = vmatpush1.msra.mxu1 %v850_v12  ;;  %958 = vmatpush1.msra.mxu0 %v815_v29 }
  0x53   :  { %882 = vmatprep.subr.mxu1 %v849_v14  ;;  %959 = vmatprep.subr.mxu0 %v814_v31 }
  0x54   :  { %883 = vmatpush1.msra.mxu1 %v848_v16  ;;  %960 = vmatpush1.msra.mxu0 %v813_v33  ;;  %v476_v16 = vunpack.c.0.s8 %v475_v8 }
  0x55   :  { %884 = vmatprep.subr.mxu1 %v847_v18  ;;  %961 = vmatprep.subr.mxu0 %v812_v35 }
  0x56   :  { %885 = vmatpush1.msra.mxu1 %v846_v20  ;;  %962 = vmatpush1.msra.mxu0 %v811_v37  ;;  %v2441_v27 = vsub.s32 %v476_v16, %v2420_v60 }
  0x57   :  { %886 = vmatprep.subr.mxu1 %v845_v22  ;;  %963 = vmatprep.subr.mxu0 %v810_v39 }
  0x58   :  { %887 = vmatpush1.msra.mxu1 %v844_v24  ;;  %964 = vmatpush1.msra.mxu0 %v809_v41 }
  0x59   :  { %888 = vmatprep.subr.mxu1 %v843_v26  ;;  %965 = vmatprep.subr.mxu0 %v808_v43 }
  0x5a   :  { %889 = vmatpush1.msra.mxu1 %v842_v28  ;;  %966 = vmatpush1.msra.mxu0 %v807_v45 }
  0x5b   :  { %890 = vmatprep.subr.mxu1 %v841_v30  ;;  %967 = vmatprep.subr.mxu0 %v806_v47 }
  0x5c   :  { %891 = vmatpush1.msra.mxu1 %v840_v32  ;;  %968 = vmatpush1.msra.mxu0 %v805_v48 }
  0x5d   :  { %892 = vmatprep.subr.mxu1 %v839_v34  ;;  %969 = vmatprep.subr.mxu0 %v804_v49 }
  0x5e   :  { %893 = vmatpush1.msra.mxu1 %v838_v36  ;;  %970 = vmatpush1.msra.mxu0 %v803_v50 }
  0x5f   :  { %894 = vmatprep.subr.mxu1 %v837_v38  ;;  %971 = vmatprep.subr.mxu0 %v802_v51 }
  0x60   :  { %895 = vmatpush1.msra.mxu1 %v836_v40  ;;  %972 = vmatpush1.msra.mxu0 %v801_v52 }
  0x61   :  { %896 = vmatprep.subr.mxu1 %v835_v42  ;;  %973 = vmatprep.subr.mxu0 %v800_v53 }
  0x62   :  { %897 = vmatpush1.msra.mxu1 %v834_v44  ;;  %974 = vmatpush1.msra.mxu0 %v799_v54 }
  0x63   :  { %1055 = vmatprep.subr.mxu1 %v1054_v46  ;;  %1932 = vmatprep.subr.mxu0 %v2201_v0 }
  0xeb   :  { %v186_v55 = vpop.f32.mrf.mxu0  ;;  %v204_v61 = vpop.f32.mrf.mxu1 }
  0xed   :  { %v188_v56 = vpop.f32.mrf.mxu0  ;;  %v2425_v2 = vpop.f32.mrf.mxu1 }
  0xf1   :  { %v192_v58 = vpop.f32.mrf.mxu0 }
  0xf3   :  { %v194_v59 = vpop.f32.mrf.mxu0 }
  0xf6   :  { %v198_v62 = vpop.f32.mrf.mxu0 }
  0xf8   :  { %v200_v63 = vpop.f32.mrf.mxu0 }
  0xfb   :  { %v287_v5 = vpop.f32.mrf.mxu1  ;;  %v405_v6 = vpop.f32.mrf.mxu0 }
  0xfc   :  { %v288_v9 = vadd.f32 %v287_v5, %v186_v55 }
  0xfd   :  { %v289_v11 = vpop.f32.mrf.mxu1  ;;  %v407_v12 = vpop.f32.mrf.mxu0 }
  0xfe   :  { %v428_v13 = vadd.f32 %v405_v6, %v288_v9  ;;  %v290_v14 = vadd.f32 %v289_v11, %v188_v56 }
  0xff   :  { %v293_v17 = vpop.f32.mrf.mxu1  ;;  %v411_v18 = vpop.f32.mrf.mxu0 }
 0x100   :  { %v448_v19 = vadd.f32 %v2432_v10, %v428_v13  ;;  %v429_v20 = vadd.f32 %v407_v12, %v290_v14  ;;  %v294_v21 = vadd.f32 %v293_v17, %v192_v58 }
 0x101   :  { %v295_v22 = vpop.f32.mrf.mxu1  ;;  %v413_v23 = vpop.f32.mrf.mxu0 }
 0x102   :  { %v449_v24 = vadd.f32 %v2436_v15, %v429_v20  ;;  %v430_v25 = vadd.f32 %v411_v18, %v294_v21  ;;  %v296_v26 = vadd.f32 %v295_v22, %v194_v59  ;;  %v456_v30 = vmax.f32 %v448_v19, 0.0 }
 0x103   :  { %v299_v28 = vpop.f32.mrf.mxu1  ;;  %v417_v29 = vpop.f32.mrf.mxu0 }
 0x104   :  { %v457_v31 = vmax.f32 %v449_v24, 0.0  ;;  %v431_v32 = vadd.f32 %v413_v23, %v296_v26  ;;  %v300_v33 = vadd.f32 %v299_v28, %v198_v62  ;;  %v450_v34 = vadd.f32 %v2432_v10, %v430_v25 }
 0x105   :  { %v301_v35 = vpop.f32.mrf.mxu1  ;;  %v419_v39 = vpop.f32.mrf.mxu0 }
 0x106   :  { %v472_v36 = vcombine.low %v456_v30, %v457_v31  ;;  %v473_v37 = vcombine.high %v456_v30, %v457_v31  ;;  %v451_v38 = vadd.f32 %v2436_v15, %v431_v32  ;;  %v302_v40 = vadd.f32 %v301_v35, %v200_v63 }
 0x107   :  { %v432_v41 = vadd.f32 %v417_v29, %v300_v33  ;;  %v305_v42 = vpop.f32.mrf.mxu1  ;;  %v458_v46 = vmax.f32 %v450_v34, 0.0  ;;  %v423_v34 = vpop.f32.mrf.mxu0 }
 0x108   :  { %v480_v43 = vrot.slane %v472_v36, %v2441_v27  ;;  %v487_v44 = vrot.slane %v473_v37, %v2441_v27  ;;  %v459_v45 = vmax.f32 %v451_v38, 0.0  ;;  %v306_v48 = vadd.f32 %v305_v42, %v204_v61 }
 0x109   :  { %v452_v47 = vadd.f32 %v2432_v10, %v432_v41  ;;  %v433_v49 = vadd.f32 %v419_v39, %v302_v40  ;;  %v307_v54 = vpop.f32.mrf.mxu1 }
 0x10a   :  { %v488_v50 = vcombine.high %v480_v43, %v480_v43  ;;  %v489_v51 = vcombine.high %v487_v44, %v487_v44  ;;  %v1821_v52 = vrot.slane %v480_v43, 9  ;;  %v1823_v53 = vrot.slane %v487_v44, 9 }
 0x10b   :  { %v490_v55 = vcombine.low %v458_v46, %v459_v45  ;;  %v491_v56 = vcombine.high %v458_v46, %v459_v45  ;;  %v460_v57 = vmax.f32 %v452_v47, 0.0  ;;  %v453_v58 = vadd.f32 %v2436_v15, %v433_v49 }
 0x10c   :  { %v1822_v59 = vrot.slane %v488_v50, 9  ;;  %v1824_v62 = vrot.slane %v489_v51, 9  ;;  %v608_v63 = vmax.f32 %v480_v43, %v1821_v52  ;;  %v610_v3 = vmax.f32 %v487_v44, %v1823_v53 }
 0x10d   :  { %v498_v61 = vrot.slane %v490_v55, %v2441_v27  ;;  %v505_v5 = vrot.slane %v491_v56, %v2441_v27  ;;  %v461_v6 = vmax.f32 %v453_v58, 0.0  ;;  %v308_v7 = vadd.f32 %v307_v54, %v2425_v2  ;;  %v425_v55 = vpop.f32.mrf.mxu0 }
 0x10e   :  { %v609_v8 = vmax.f32 %v488_v50, %v1822_v59  ;;  %v611_v9 = vmax.f32 %v489_v51, %v1824_v62  ;;  %v640_v11 = vrot.slane %v608_v63, 2  ;;  %v642_v12 = vrot.slane %v610_v3, 2 }
 0x10f   :  { %v506_v13 = vcombine.high %v498_v61, %v498_v61  ;;  %v507_v14 = vcombine.high %v505_v5, %v505_v5  ;;  %v1825_v16 = vrot.slane %v498_v61, 9  ;;  %v1827_v17 = vrot.slane %v505_v5, 9 }
 0x110   :  { %v641_v18 = vrot.slane %v609_v8, 2  ;;  %v643_v19 = vrot.slane %v611_v9, 2  ;;  %v672_v20 = vmax.f32 %v608_v63, %v640_v11  ;;  %v674_v21 = vmax.f32 %v610_v3, %v642_v12 }
 0x111   :  { %v1826_v22 = vrot.slane %v506_v13, 9  ;;  %v1828_v23 = vrot.slane %v507_v14, 9  ;;  %v612_v24 = vmax.f32 %v498_v61, %v1825_v16  ;;  %v614_v25 = vmax.f32 %v505_v5, %v1827_v17 }
 0x112   :  { %v673_v2 = vmax.f32 %v609_v8, %v641_v18  ;;  %v675_v26 = vmax.f32 %v611_v9, %v643_v19  ;;  %v711_v28 = vrot.slane %v672_v20, %v2423_v1  ;;  %v719_v29 = vrot.slane %v674_v21, %v2423_v1  ;;  %v1052_v18 = vld [vmem:[#allocation4 + $0x2e8] sm:$0xff]  ;;  %v1051_v21 = vld [vmem:[#allocation4 + $0x2e0] sm:$0xff] }
 0x113   :  { %v613_v30 = vmax.f32 %v506_v13, %v1826_v22  ;;  %v615_v31 = vmax.f32 %v507_v14, %v1828_v23  ;;  %v644_v32 = vrot.slane %v612_v24, 2  ;;  %v646_v33 = vrot.slane %v614_v25, 2  ;;  %v1053_v13 = vld [vmem:[#allocation4 + $0x2f0] sm:$0xff] }
 0x114   :  { %v715_v35 = vrot.slane %v673_v2, %v2423_v1  ;;  %v723_v36 = vrot.slane %v675_v26, %v2423_v1  ;;  %v508_v37 = vcombine.low %v460_v57, %v461_v6  ;;  %v509_v38 = vcombine.high %v460_v57, %v461_v6  ;;  %v1049_v2 = vld [vmem:[#allocation4 + $0x2d0] sm:$0xff] }
 0x115   :  { %v645_v39 = vrot.slane %v613_v30, 2  ;;  %v647_v40 = vrot.slane %v615_v31, 2  ;;  %v676_v41 = vmax.f32 %v612_v24, %v644_v32  ;;  %v678_v42 = vmax.f32 %v614_v25, %v646_v33 }
 0x116   :  { %v773_v43 = vsel %vm772_vm2, %v715_v35, %v711_v28  ;;  %v516_v44 = vrot.slane %v508_v37, %v2441_v27  ;;  %v523_v45 = vrot.slane %v509_v38, %v2441_v27  ;;  %v434_v46 = vadd.f32 %v423_v34, %v306_v48  ;;  %v1046_v35 = vld [vmem:[#allocation4 + $0x2b8] sm:$0xff]  ;;  %v1045_v37 = vld [vmem:[#allocation4 + $0x2b0] sm:$0xff] }
 0x117   :  { %v775_v47 = vsel %vm774_vm3, %v719_v29, %v773_v43  ;;  %v677_v49 = vmax.f32 %v613_v30, %v645_v39  ;;  %v679_v50 = vmax.f32 %v615_v31, %v647_v40  ;;  %v727_v51 = vrot.slane %v676_v41, %v2423_v1  ;;  %v1047_v31 = vld [vmem:[#allocation4 + $0x2c0] sm:$0xff] }
 0x118   :  { %v777_v52 = vsel %vm776_vm4, %v723_v36, %v775_v47  ;;  %v524_v53 = vcombine.high %v516_v44, %v516_v44  ;;  %v525_v54 = vcombine.high %v523_v45, %v523_v45  ;;  %v735_v57 = vrot.slane %v678_v42, %v2423_v1  ;;  %v1044_v42 = vld [vmem:[#allocation4 + $0x2a8] sm:$0xff] }
 0x119   :  { %v731_v56 = vrot.slane %v677_v49, %v2423_v1  ;;  %v779_v58 = vsel %vm778_vm5, %v727_v51, %v777_v52  ;;  %v1829_v59 = vrot.slane %v516_v44, 9  ;;  %v739_v48 = vrot.slane %v679_v50, %v2423_v1  ;;  %v1042_v52 = vld [vmem:[#allocation4 + $0x298] sm:$0xff] }
 0x11a   :  { %v1830_v62 = vrot.slane %v524_v53, 9  ;;  %v1831_v63 = vrot.slane %v523_v45, 9  ;;  %v1832_v3 = vrot.slane %v525_v54, 9  ;;  %v454_v6 = vadd.f32 %v2432_v10, %v434_v46  ;;  %v1043_v46 = vld [vmem:[#allocation4 + $0x2a0] sm:$0xff] }
 0x11b   :  { %v781_v61 = vsel %vm780_vm6, %v731_v56, %v779_v58  ;;  %v616_v5 = vmax.f32 %v516_v44, %v1829_v59  ;;  %v435_v8 = vadd.f32 %v425_v55, %v308_v7  ;;  %v1050_v7 = vld [vmem:[#allocation4 + $0x2d8] sm:$0xff]  ;;  %v1040_v59 = vld [vmem:[#allocation4 + $0x288] sm:$0xff] }
 0x11c   :  { %v783_v9 = vsel %vm782_vm7, %v735_v57, %v781_v61  ;;  %v617_v11 = vmax.f32 %v524_v53, %v1830_v62  ;;  %v618_v12 = vmax.f32 %v523_v45, %v1831_v63  ;;  %v619_v19 = vmax.f32 %v525_v54, %v1832_v3  ;;  %v1041_v54 = vld [vmem:[#allocation4 + $0x290] sm:$0xff]  ;;  %v1039_v63 = vld [vmem:[#allocation4 + $0x280] sm:$0xff] }
 0x11d   :  { %v785_v14 = vsel %vm784_vm8, %v739_v48, %v783_v9  ;;  %v648_v16 = vrot.slane %v616_v5, 2  ;;  %v455_v17 = vadd.f32 %v2436_v15, %v435_v8  ;;  %v462_v23 = vmax.f32 %v454_v6, 0.0  ;;  %v1048_v15 = vld [vmem:[#allocation4 + $0x2c8] sm:$0xff]  ;;  %v1038_v6 = vld [vmem:[#allocation4 + $0x278] sm:$0xff] }
 0x11e   :  { %795 = vst [vmem:[#allocation3 + $0x1] sm:$0xff] %v785_v14  ;;  %v649_v20 = vrot.slane %v617_v11, 2  ;;  %931 = vmatmul.mubr.f32.vlgmr.msra.gmra.mxu1 %v785_v14  ;;  %v650_v22 = vrot.slane %v618_v12, 2  ;;  %v651_v29 = vrot.slane %v619_v19, 2 }
 0x11f   :  { %v463_v10 = vmax.f32 %v455_v17, 0.0  ;;  %1056 = vmatpush1.msra.mxu1 %v1053_v13  ;;  %936 = vmatprep.mubr.f32.mxu1 %v2201_v0  ;;  %v680_v24 = vmax.f32 %v616_v5, %v648_v16  ;;  %v1036_v16 = vld [vmem:[#allocation4 + $0x268] sm:$0xff]  ;;  %v1035_v17 = vld [vmem:[#allocation4 + $0x260] sm:$0xff] }
 0x120   :  { %v681_v25 = vmax.f32 %v617_v11, %v649_v20  ;;  %1057 = vmatprep.subr.mxu1 %v1052_v18  ;;  %v682_v32 = vmax.f32 %v618_v12, %v650_v22  ;;  %v683_v43 = vmax.f32 %v619_v19, %v651_v29  ;;  %v1037_v11 = vld [vmem:[#allocation4 + $0x270] sm:$0xff]  ;;  %v1034_v20 = vld [vmem:[#allocation4 + $0x258] sm:$0xff]  ;;  %v1027_v29 = vld [vmem:[#allocation4 + $0x220] sm:$0xff] }
 0x121   :  { %v526_v26 = vcombine.low %v462_v23, %v463_v10  ;;  %v527_v28 = vcombine.high %v462_v23, %v463_v10  ;;  %1058 = vmatpush1.msra.mxu1 %v1051_v21  ;;  %v743_v36 = vrot.slane %v680_v24, %v2423_v1  ;;  %v1033_v22 = vld [vmem:[#allocation4 + $0x250] sm:$0xff] }
 0x122   :  { %v747_v30 = vrot.slane %v681_v25, %v2423_v1  ;;  %1059 = vmatprep.subr.mxu1 %v1050_v7  ;;  %v751_v47 = vrot.slane %v682_v32, %v2423_v1  ;;  %v755_v48 = vrot.slane %v683_v43, %v2423_v1  ;;  %v1032_v7 = vld [vmem:[#allocation4 + $0x248] sm:$0xff]  ;;  %v1031_v25 = vld [vmem:[#allocation4 + $0x240] sm:$0xff] }
 0x123   :  { %v534_v33 = vrot.slane %v526_v26, %v2441_v27  ;;  %v541_v34 = vrot.slane %v527_v28, %v2441_v27  ;;  %1060 = vmatpush1.msra.mxu1 %v1049_v2  ;;  %v1030_v26 = vld [vmem:[#allocation4 + $0x238] sm:$0xff]  ;;  %v1029_v28 = vld [vmem:[#allocation4 + $0x230] sm:$0xff]  ;;  %v1024_v32 = vld [vmem:[#allocation4 + $0x208] sm:$0xff] }
 0x124   :  { %1061 = vmatprep.subr.mxu1 %v1048_v15  ;;  %v786_v44 = vsel %vm772_vm2, %v747_v30, %v743_v36  ;;  %v1028_v15 = vld [vmem:[#allocation4 + $0x228] sm:$0xff]  ;;  %v1026_v30 = vld [vmem:[#allocation4 + $0x218] sm:$0xff]  ;;  %v1280_v43 = vld [vmem:[#allocation7 + $0x60] sm:$0xff] }
 0x125   :  { %v542_v38 = vcombine.high %v534_v33, %v534_v33  ;;  %v543_v39 = vcombine.high %v541_v34, %v541_v34  ;;  %v1833_v40 = vrot.slane %v534_v33, 9  ;;  %v797_v41 = vld [vmem:[#allocation3] sm:$0xff]  ;;  %1062 = vmatpush1.msra.mxu1 %v1047_v31  ;;  %v1835_v45 = vrot.slane %v541_v34, 9  ;;  %v1025_v31 = vld [vmem:[#allocation4 + $0x210] sm:$0xff] }
 0x126   :  { %1008 = vmatmul.mubr.f32.vlgmr.msra.gmra.mxu0 %v797_v41  ;;  %1063 = vmatprep.subr.mxu1 %v1046_v35  ;;  %v787_v55 = vsel %vm774_vm3, %v751_v47, %v786_v44  ;;  %v1020_v35 = vld [vmem:[#allocation3 + $0x2] sm:$0xff]  ;;  %v1278_v47 = vld [vmem:[#allocation7 + $0x50] sm:$0xff] }
 0x127   :  { %v1834_v49 = vrot.slane %v542_v38, 9  ;;  %v1836_v50 = vrot.slane %v543_v39, 9  ;;  %v620_v51 = vmax.f32 %v534_v33, %v1833_v40  ;;  %1013 = vmatprep.mubr.f32.mxu0 %v2201_v0  ;;  %1064 = vmatpush1.msra.mxu1 %v1045_v37  ;;  %v622_v53 = vmax.f32 %v541_v34, %v1835_v45  ;;  %v1023_v33 = vld [vmem:[#allocation4 + $0x200] sm:$0xff]  ;;  %v1283_v37 = vld [vmem:[#allocation7 + $0x78] sm:$0xff]  ;;  %v1299_v40 = vld [vmem:[#allocation7 + $0xf0] sm:$0xff] }
 0x128   :  { %1065 = vmatprep.subr.mxu1 %v1044_v42  ;;  %v788_v8 = vsel %vm776_vm4, %v755_v48, %v787_v55  ;;  %v1281_v41 = vld [vmem:[#allocation7 + $0x68] sm:$0xff]  ;;  %v1297_v44 = vld [vmem:[#allocation7 + $0xe0] sm:$0xff]  ;;  %v1279_v45 = vld [vmem:[#allocation7 + $0x58] sm:$0xff] }
 0x129   :  { %v621_v56 = vmax.f32 %v542_v38, %v1834_v49  ;;  %v623_v57 = vmax.f32 %v543_v39, %v1836_v50  ;;  %v652_v58 = vrot.slane %v620_v51, 2  ;;  %1066 = vmatpush1.msra.mxu1 %v1043_v46  ;;  %v654_v62 = vrot.slane %v622_v53, 2  ;;  %v1300_v38 = vld [vmem:[#allocation7 + $0xf8] sm:$0xff]  ;;  %v1282_v39 = vld [vmem:[#allocation7 + $0x70] sm:$0xff]  ;;  %v1298_v42 = vld [vmem:[#allocation7 + $0xe8] sm:$0xff] }
 0x12a   :  { %1067 = vmatprep.subr.mxu1 %v1042_v52  ;;  %1933 = vmatpush3.msra.mxu0 %v1300_v38  ;;  %v1296_v46 = vld [vmem:[#allocation7 + $0xd8] sm:$0xff]  ;;  %v1295_v49 = vld [vmem:[#allocation7 + $0xd0] sm:$0xff]  ;;  %v1277_v50 = vld [vmem:[#allocation7 + $0x48] sm:$0xff] }
 0x12b   :  { %v653_v3 = vrot.slane %v621_v56, 2  ;;  %v655_v61 = vrot.slane %v623_v57, 2  ;;  %v684_v5 = vmax.f32 %v620_v51, %v652_v58  ;;  %1068 = vmatpush1.msra.mxu1 %v1041_v54  ;;  %v686_v9 = vmax.f32 %v622_v53, %v654_v62  ;;  %1934 = vmatprep.subr.mxu0 %v2201_v0  ;;  %v1294_v51 = vld [vmem:[#allocation7 + $0xc8] sm:$0xff]  ;;  %v1276_v52 = vld [vmem:[#allocation7 + $0x40] sm:$0xff]  ;;  %v1275_v54 = vld [vmem:[#allocation7 + $0x38] sm:$0xff] }
 0x12c   :  { %1069 = vmatprep.subr.mxu1 %v1040_v59  ;;  %1935 = vmatpush3.msra.mxu0 %v1299_v40  ;;  %v1293_v53 = vld [vmem:[#allocation7 + $0xc0] sm:$0xff]  ;;  %v1292_v55 = vld [vmem:[#allocation7 + $0xb8] sm:$0xff]  ;;  %v1273_v58 = vld [vmem:[#allocation7 + $0x28] sm:$0xff] }
 0x12d   :  { %v685_v12 = vmax.f32 %v621_v56, %v653_v3  ;;  %v687_v13 = vmax.f32 %v623_v57, %v655_v61  ;;  %v759_v14 = vrot.slane %v684_v5, %v2423_v1  ;;  %1070 = vmatpush1.msra.mxu1 %v1039_v63  ;;  %v767_v21 = vrot.slane %v686_v9, %v2423_v1  ;;  %v1274_v56 = vld [vmem:[#allocation7 + $0x30] sm:$0xff]  ;;  %v1290_v59 = vld [vmem:[#allocation7 + $0xa8] sm:$0xff]  ;;  %v1272_v48 = vld [vmem:[#allocation7 + $0x20] sm:$0xff] }
 0x12e   :  { %1071 = vmatprep.subr.mxu1 %v1038_v6  ;;  %1936 = vmatprep.subr.mxu0 %v2201_v0  ;;  %v1291_v57 = vld [vmem:[#allocation7 + $0xb0] sm:$0xff]  ;;  %v1289_v62 = vld [vmem:[#allocation7 + $0xa0] sm:$0xff]  ;;  %v1271_v63 = vld [vmem:[#allocation7 + $0x18] sm:$0xff] }
 0x12f   :  { %v763_v18 = vrot.slane %v685_v12, %v2423_v1  ;;  %v789_v19 = vsel %vm778_vm5, %v759_v14, %v788_v8  ;;  %1072 = vmatpush1.msra.mxu1 %v1037_v11  ;;  %v771_v23 = vrot.slane %v687_v13, %v2423_v1  ;;  %1937 = vmatpush3.msra.mxu0 %v1298_v42  ;;  %v1288_v3 = vld [vmem:[#allocation7 + $0x98] sm:$0xff]  ;;  %v1270_v61 = vld [vmem:[#allocation7 + $0x10] sm:$0xff]  ;;  %v1269_v6 = vld [vmem:[#allocation7 + $0x8] sm:$0xff] }
 0x130   :  { %1073 = vmatprep.subr.mxu1 %v1036_v16  ;;  %1938 = vmatprep.subr.mxu0 %v2201_v0  ;;  %v1287_v5 = vld [vmem:[#allocation7 + $0x90] sm:$0xff]  ;;  %v1286_v8 = vld [vmem:[#allocation7 + $0x88] sm:$0xff]  ;;  %v1268_v9 = vld [vmem:[#allocation7] sm:$0xff] }
 0x131   :  { %v790_v10 = vsel %vm780_vm6, %v763_v18, %v789_v19  ;;  %1074 = vmatpush1.msra.mxu1 %v1035_v17  ;;  %1939 = vmatpush3.msra.mxu0 %v1297_v44  ;;  %v1285_v11 = vld [vmem:[#allocation7 + $0x80] sm:$0xff]  ;;  %v1136_v18 = vld [vmem:[%s2664_s4] sm:$0x3] }
 0x132   :  { %v791_v24 = vsel %vm782_vm7, %v767_v21, %v790_v10  ;;  %1075 = vmatprep.subr.mxu1 %v1034_v20  ;;  %1940 = vmatprep.subr.mxu0 %v2201_v0 }
 0x133   :  { %v792_v2 = vsel %vm784_vm8, %v771_v23, %v791_v24  ;;  %1076 = vmatpush1.msra.mxu1 %v1033_v22  ;;  %1941 = vmatpush3.msra.mxu0 %v1296_v46  ;;  %v1141_v22 = vrot.slane %v1136_v18, %v2423_v1  ;;  %v1145_v24 = vrot.slane %v1136_v18, %v444_v4 }
 0x134   :  { %796 = vst [vmem:[#allocation3 + $0x11] sm:$0xff] %v792_v2  ;;  %937 = vmatmul.mubr.f32.gmra.mxu1 %v792_v2  ;;  %1077 = vmatprep.subr.mxu1 %v1032_v7 }
 0x135   :  { %1078 = vmatpush1.msra.mxu1 %v1031_v25  ;;  %1119 = vmatprep.mubr.f32.mxu1 %v2201_v0 }
 0x136   :  { %1079 = vmatprep.subr.mxu1 %v1030_v26  ;;  %1942 = vmatprep.subr.mxu0 %v2201_v0 }
 0x137   :  { %1080 = vmatpush1.msra.mxu1 %v1029_v28  ;;  %1943 = vmatpush3.msra.mxu0 %v1295_v49 }
 0x138   :  { %1081 = vmatprep.subr.mxu1 %v1028_v15  ;;  %1944 = vmatprep.subr.mxu0 %v2201_v0 }
 0x139   :  { %1082 = vmatpush1.msra.mxu1 %v1027_v29  ;;  %1945 = vmatpush3.msra.mxu0 %v1294_v51 }
 0x13a   :  { %1083 = vmatprep.subr.mxu1 %v1026_v30  ;;  %1946 = vmatprep.subr.mxu0 %v2201_v0 }
 0x13b   :  { %v798_v34 = vld [vmem:[#allocation3 + $0x10] sm:$0xff]  ;;  %1084 = vmatpush1.msra.mxu1 %v1025_v31  ;;  %1947 = vmatpush3.msra.mxu0 %v1293_v53 }
 0x13c   :  { %1014 = vmatmul.mubr.f32.gmra.mxu0 %v798_v34  ;;  %1085 = vmatprep.subr.mxu1 %v1024_v32  ;;  %v1021_v36 = vld [vmem:[#allocation3 + $0x12] sm:$0xff] }
 0x13d   :  { %1086 = vmatpush1.msra.mxu1 %v1023_v33  ;;  %1948 = vmatprep.subr.mxu0 %v2201_v0 }
 0x13e   :  { %1120 = vmatmul.mubr.f32.vlgmr.msra.gmra.mxu1 %v1020_v35  ;;  %1967 = vmatprep.subr.mxu1 %v2201_v0 }
 0x13f   :  { %1125 = vmatprep.mubr.f32.mxu1 %v2201_v0  ;;  %1968 = vmatpush3.msra.mxu1 %v1283_v37 }
 0x140   :  { %1969 = vmatprep.subr.mxu1 %v2201_v0  ;;  %1949 = vmatpush3.msra.mxu0 %v1292_v55 }
 0x141   :  { %1970 = vmatpush3.msra.mxu1 %v1282_v39  ;;  %1950 = vmatprep.subr.mxu0 %v2201_v0 }
 0x142   :  { %1126 = vmatmul.mubr.f32.gmra.mxu1 %v1021_v36  ;;  %1971 = vmatprep.subr.mxu1 %v2201_v0 }
 0x143   :  { %1972 = vmatpush3.msra.mxu1 %v1281_v41  ;;  %1951 = vmatpush3.msra.mxu0 %v1291_v57 }
 0x144   :  { %1973 = vmatprep.subr.mxu1 %v2201_v0  ;;  %1952 = vmatprep.subr.mxu0 %v2201_v0 }
 0x145   :  { %1974 = vmatpush3.msra.mxu1 %v1280_v43  ;;  %1953 = vmatpush3.msra.mxu0 %v1290_v59 }
 0x146   :  { %1975 = vmatprep.subr.mxu1 %v2201_v0  ;;  %1954 = vmatprep.subr.mxu0 %v2201_v0 }
 0x147   :  { %1976 = vmatpush3.msra.mxu1 %v1279_v45  ;;  %1955 = vmatpush3.msra.mxu0 %v1289_v62 }
 0x148   :  { %1977 = vmatprep.subr.mxu1 %v2201_v0  ;;  %1956 = vmatprep.subr.mxu0 %v2201_v0 }
 0x149   :  { %1978 = vmatpush3.msra.mxu1 %v1278_v47  ;;  %1957 = vmatpush3.msra.mxu0 %v1288_v3 }
 0x14a   :  { %1979 = vmatprep.subr.mxu1 %v2201_v0  ;;  %1958 = vmatprep.subr.mxu0 %v2201_v0 }
 0x14b   :  { %1980 = vmatpush3.msra.mxu1 %v1277_v50  ;;  %1959 = vmatpush3.msra.mxu0 %v1287_v5 }
 0x14c   :  { %1981 = vmatprep.subr.mxu1 %v2201_v0  ;;  %1960 = vmatprep.subr.mxu0 %v2201_v0 }
 0x14d   :  { %1982 = vmatpush3.msra.mxu1 %v1276_v52  ;;  %1961 = vmatpush3.msra.mxu0 %v1286_v8 }
 0x14e   :  { %1983 = vmatprep.subr.mxu1 %v2201_v0  ;;  %1962 = vmatprep.subr.mxu0 %v2201_v0 }
 0x14f   :  { %1984 = vmatpush3.msra.mxu1 %v1275_v54  ;;  %1999 = vmatprep.mubr.msk.f32.mxu1 %vm2203_vm9, %v2201_v0 }
 0x150   :  { %1985 = vmatprep.subr.mxu1 %v2201_v0  ;;  %1963 = vmatpush3.msra.mxu0 %v1285_v11  ;;  %v1481_v11 = vld [vmem:[#allocation7 + $0x178] sm:$0xff] }
 0x151   :  { %1986 = vmatpush3.msra.mxu1 %v1274_v56  ;;  %1964 = vmatprep.mubr.msk.f32.mxu0 %vm2203_vm9, %v2201_v0 }
 0x152   :  { %1987 = vmatprep.subr.mxu1 %v2201_v0  ;;  %2002 = vmatprep.subr.mxu0 %v2201_v0 }
 0x153   :  { %1988 = vmatpush3.msra.mxu1 %v1273_v58 }
 0x154   :  { %1989 = vmatprep.subr.mxu1 %v2201_v0 }
 0x155   :  { %1990 = vmatpush3.msra.mxu1 %v1272_v48 }
 0x156   :  { %1991 = vmatprep.subr.mxu1 %v2201_v0 }
 0x157   :  { %1992 = vmatpush3.msra.mxu1 %v1271_v63 }
 0x158   :  { %1993 = vmatprep.subr.mxu1 %v2201_v0 }
 0x159   :  { %1994 = vmatpush3.msra.mxu1 %v1270_v61  ;;  %v1581_v61 = vld [vmem:[#allocation7 + $0x1f8] sm:$0xff] }
 0x15a   :  { %1995 = vmatprep.subr.mxu1 %v2201_v0 }
 0x15b   :  { %1996 = vmatpush3.msra.mxu1 %v1269_v6 }
 0x15c   :  { %1997 = vmatprep.subr.mxu1 %v2201_v0 }
 0x15d   :  { %1998 = vmatpush3.msra.mxu1 %v1268_v9 }
 0x15e   :  { %2037 = vmatprep.subr.mxu1 %v2201_v0 }
 0x1de   :  { %v932_v12 = vpop.f32.mrf.mxu1 }
 0x1e0   :  { %v934_v14 = vpop.f32.mrf.mxu1 }
 0x1e6   :  { %v1009_v13 = vpop.f32.mrf.mxu0 }
 0x1e7   :  { %v1010_v21 = vadd.f32 %v1009_v13, %v932_v12  ;;  %v1580_v12 = vld [vmem:[#allocation7 + $0x1f0] sm:$0xff] }
 0x1e8   :  { %v1011_v17 = vpop.f32.mrf.mxu0 }
 0x1e9   :  { %v1012_v10 = vadd.f32 %v1011_v17, %v934_v14  ;;  %v1579_v17 = vld [vmem:[#allocation7 + $0x1e8] sm:$0xff] }
 0x1f4   :  { %v938_v16 = vpop.f32.mrf.mxu1 }
 0x1f6   :  { %v940_v20 = vpop.f32.mrf.mxu1 }
 0x1fc   :  { %v1015_v19 = vpop.f32.mrf.mxu0 }
 0x1fd   :  { %v1016_v26 = vadd.f32 %v1015_v19, %v938_v16  ;;  %v1480_v16 = vld [vmem:[#allocation7 + $0x170] sm:$0xff]  ;;  %v1479_v19 = vld [vmem:[#allocation7 + $0x168] sm:$0xff] }
 0x1fe   :  { %v1121_v23 = vpop.f32.mrf.mxu1  ;;  %v1017_v25 = vpop.f32.mrf.mxu0 }
 0x1ff   :  { %v1132_v7 = vadd.f32 %v1121_v23, %v1010_v21  ;;  %v1018_v30 = vadd.f32 %v1017_v25, %v940_v20  ;;  %v1578_v20 = vld [vmem:[#allocation7 + $0x1e0] sm:$0xff]  ;;  %v1577_v23 = vld [vmem:[#allocation7 + $0x1d8] sm:$0xff] }
 0x200   :  { %v1123_v2 = vpop.f32.mrf.mxu1 }
 0x201   :  { %v1148_v28 = vadd.f32 %v1141_v22, %v1132_v7  ;;  %v1133_v15 = vadd.f32 %v1123_v2, %v1012_v10  ;;  %v1477_v7 = vld [vmem:[#allocation7 + $0x158] sm:$0xff]  ;;  %v1575_v2 = vld [vmem:[#allocation7 + $0x1c8] sm:$0xff] }
 0x202   :  { %v1127_v29 = vpop.f32.mrf.mxu1 }
 0x203   :  { %v1149_v31 = vadd.f32 %v1145_v24, %v1133_v15  ;;  %v1134_v32 = vadd.f32 %v1127_v29, %v1016_v26  ;;  %v1152_v34 = vmax.f32 %v1148_v28, 0.0  ;;  %v1475_v28 = vld [vmem:[#allocation7 + $0x148] sm:$0xff]  ;;  %v1574_v15 = vld [vmem:[#allocation7 + $0x1c0] sm:$0xff] }
 0x204   :  { %v1129_v33 = vpop.f32.mrf.mxu1 }
 0x205   :  { %v1153_v35 = vmax.f32 %v1149_v31, 0.0  ;;  %v1135_v36 = vadd.f32 %v1129_v33, %v1018_v30  ;;  %v1150_v37 = vadd.f32 %v1141_v22, %v1134_v32  ;;  %v1478_v22 = vld [vmem:[#allocation7 + $0x160] sm:$0xff]  ;;  %v1573_v32 = vld [vmem:[#allocation7 + $0x1b8] sm:$0xff] }
 0x206   :  { %v1474_v31 = vld [vmem:[#allocation7 + $0x140] sm:$0xff] }
 0x207   :  { %v1160_v38 = vcombine.low %v1152_v34, %v1153_v35  ;;  %v1151_v39 = vadd.f32 %v1145_v24, %v1135_v36  ;;  %v1154_v4 = vmax.f32 %v1150_v37, 0.0  ;;  %v1161_v13 = vcombine.high %v1152_v34, %v1153_v35  ;;  %v1576_v24 = vld [vmem:[#allocation7 + $0x1d0] sm:$0xff]  ;;  %v1473_v35 = vld [vmem:[#allocation7 + $0x138] sm:$0xff] }
 0x208   :  { %v1572_v36 = vld [vmem:[#allocation7 + $0x1b0] sm:$0xff] }
 0x209   :  { %v1168_v40 = vrot.slane %v1160_v38, %v2441_v27  ;;  %v1155_v60 = vmax.f32 %v1151_v39, 0.0  ;;  %v1175_v21 = vrot.slane %v1161_v13, %v2441_v27  ;;  %v1472_v39 = vld [vmem:[#allocation7 + $0x130] sm:$0xff]  ;;  %v1683_v13 = vld [vmem:[%s2667_s7 + $0x48] sm:$0xff] }
 0x20b   :  { %v1176_v41 = vcombine.high %v1168_v40, %v1168_v40  ;;  %v1837_v42 = vrot.slane %v1168_v40, 9  ;;  %v1178_v43 = vcombine.low %v1154_v4, %v1155_v60  ;;  %v1179_v5 = vcombine.high %v1154_v4, %v1155_v60 }
 0x20c   :  { %v1177_v25 = vcombine.high %v1175_v21, %v1175_v21  ;;  %v1839_v33 = vrot.slane %v1175_v21, 9 }
 0x20d   :  { %v1838_v44 = vrot.slane %v1176_v41, 9  ;;  %v1228_v45 = vmax.f32 %v1168_v40, %v1837_v42  ;;  %v1186_v46 = vrot.slane %v1178_v43, %v2441_v27  ;;  %v1193_v18 = vrot.slane %v1179_v5, %v2441_v27  ;;  %v1476_v27 = vld [vmem:[#allocation7 + $0x150] sm:$0xff]  ;;  %v1571_v40 = vld [vmem:[#allocation7 + $0x1a8] sm:$0xff]  ;;  %v1570_v42 = vld [vmem:[#allocation7 + $0x1a0] sm:$0xff] }
 0x20e   :  { %v1840_v29 = vrot.slane %v1177_v25, 9  ;;  %v1230_v60 = vmax.f32 %v1175_v21, %v1839_v33  ;;  %v1676_v21 = vld [vmem:[%s2667_s7 + $0x10] sm:$0xff] }
 0x20f   :  { %v1229_v47 = vmax.f32 %v1176_v41, %v1838_v44  ;;  %v1244_v49 = vrot.slane %v1228_v45, 2  ;;  %v1194_v50 = vcombine.high %v1186_v46, %v1186_v46  ;;  %v1841_v51 = vrot.slane %v1186_v46, 9  ;;  %v1471_v41 = vld [vmem:[#allocation7 + $0x128] sm:$0xff] }
 0x210   :  { %v1195_v10 = vcombine.high %v1193_v18, %v1193_v18  ;;  %v1843_v30 = vrot.slane %v1193_v18, 9  ;;  %v1231_v38 = vmax.f32 %v1177_v25, %v1840_v29  ;;  %v1845_v29 = vld [vmem:[%s2666_s6] ss:$0 sm:$0xff] }
 0x211   :  { %v1842_v52 = vrot.slane %v1194_v50, 9  ;;  %v1232_v53 = vmax.f32 %v1186_v46, %v1841_v51  ;;  %v1245_v54 = vrot.slane %v1229_v47, 2  ;;  %v1260_v57 = vmax.f32 %v1228_v45, %v1244_v49  ;;  %v1470_v45 = vld [vmem:[#allocation7 + $0x120] sm:$0xff]  ;;  %v1569_v46 = vld [vmem:[#allocation7 + $0x198] sm:$0xff]  ;;  %v1568_v51 = vld [vmem:[#allocation7 + $0x190] sm:$0xff] }
 0x212   :  { %v1844_v26 = vrot.slane %v1195_v10, 9  ;;  %v1234_v37 = vmax.f32 %v1193_v18, %v1843_v30  ;;  %v1247_v43 = vrot.slane %v1231_v38, 2  ;;  %v1246_v49 = vrot.slane %v1230_v60, 2  ;;  %v1679_v18 = vld [vmem:[%s2667_s7 + $0x28] sm:$0xff] }
 0x213   :  { %v1233_v55 = vmax.f32 %v1194_v50, %v1842_v52  ;;  %v1248_v56 = vrot.slane %v1232_v53, 2  ;;  %v1261_v48 = vmax.f32 %v1229_v47, %v1245_v54  ;;  %v1388_v62 = vrot.slane %v1260_v57, %v2423_v1  ;;  %v1469_v50 = vld [vmem:[#allocation7 + $0x118] sm:$0xff]  ;;  %v1468_v54 = vld [vmem:[#allocation7 + $0x110] sm:$0xff] }
 0x214   :  { %v1235_v34 = vmax.f32 %v1195_v10, %v1844_v26  ;;  %v1250_v44 = vrot.slane %v1234_v37, 2  ;;  %v1263_v52 = vmax.f32 %v1231_v38, %v1247_v43  ;;  %v1262_v57 = vmax.f32 %v1230_v60, %v1246_v49 }
 0x215   :  { %v1264_v58 = vmax.f32 %v1232_v53, %v1248_v56  ;;  %v1249_v59 = vrot.slane %v1233_v55, 2  ;;  %v1306_v8 = vrot.slane %v1261_v48, %v2423_v1 }
 0x216   :  { %v1251_v4 = vrot.slane %v1235_v34, 2  ;;  %v1266_v53 = vmax.f32 %v1234_v37, %v1250_v44  ;;  %v1587_v48 = vrot.slane %v1263_v52, %v2423_v1 }
 0x217   :  { %v1392_v63 = vrot.slane %v1264_v58, %v2423_v1  ;;  %v1265_v3 = vmax.f32 %v1233_v55, %v1249_v59  ;;  %v1567_v55 = vld [vmem:[#allocation7 + $0x188] sm:$0xff]  ;;  %v1566_v59 = vld [vmem:[#allocation7 + $0x180] sm:$0xff] }
 0x218   :  { %v1267_v47 = vmax.f32 %v1235_v34, %v1251_v4  ;;  %v1467_v58 = vld [vmem:[#allocation7 + $0x108] sm:$0xff] }
 0x219   :  { %v1393_v6 = vsel %vm772_vm2, %v1392_v63, %v1388_v62  ;;  %v1310_v9 = vrot.slane %v1265_v3, %v2423_v1  ;;  %v1491_v62 = vrot.slane %v1266_v53, %v2423_v1  ;;  %v1466_v63 = vld [vmem:[#allocation7 + $0x100] sm:$0xff] }
 0x21a   :  { %2000 = vmatmul.mubr.f32.vlgmr.msra.gmra.mxu1 %v1393_v6  ;;  %v1591_v56 = vrot.slane %v1267_v47, %v2423_v1  ;;  %v1689_v6 = vld [vmem:[%s2667_s7 + $0x78] sm:$0xff] }
 0x21b   :  { %2038 = vmatpush3.msra.mxu1 %v1581_v61  ;;  %v1311_v14 = vsel %vm772_vm2, %v1310_v9, %v1306_v8  ;;  %2069 = vmatprep.mubr.msk.f32.mxu1 %vm2203_vm9, %v2201_v0  ;;  %v1487_v61 = vrot.slane %v1262_v57, %v2423_v1  ;;  %v1688_v1 = vld [vmem:[%s2667_s7 + $0x70] sm:$0xff]  ;;  %v1687_v8 = vld [vmem:[%s2667_s7 + $0x68] sm:$0xff]  ;;  %v1686_v9 = vld [vmem:[%s2667_s7 + $0x60] sm:$0xff] }
 0x21c   :  { %2039 = vmatprep.subr.mxu1 %v2201_v0  ;;  %1965 = vmatmul.mubr.f32.vlgmr.msra.gmra.mxu0 %v1311_v14  ;;  %v1592_v3 = vsel %vm772_vm2, %v1591_v56, %v1587_v48  ;;  %v1682_v14 = vld [vmem:[%s2667_s7 + $0x40] sm:$0xff] }
 0x21d   :  { %2003 = vmatpush3.msra.mxu0 %v1481_v11  ;;  %2040 = vmatpush3.msra.mxu1 %v1580_v12  ;;  %v1492_v5 = vsel %vm772_vm2, %v1491_v62, %v1487_v61  ;;  %v1685_v11 = vld [vmem:[%s2667_s7 + $0x58] sm:$0xff]  ;;  %v1684_v12 = vld [vmem:[%s2667_s7 + $0x50] sm:$0xff] }
 0x21e   :  { %2004 = vmatprep.subr.mxu0 %v2201_v0  ;;  %2041 = vmatprep.subr.mxu1 %v2201_v0 }
 0x21f   :  { %2005 = vmatpush3.msra.mxu0 %v1480_v16  ;;  %2042 = vmatpush3.msra.mxu1 %v1579_v17  ;;  %v1681_v16 = vld [vmem:[%s2667_s7 + $0x38] sm:$0xff]  ;;  %v1680_v17 = vld [vmem:[%s2667_s7 + $0x30] sm:$0xff] }
 0x220   :  { %2006 = vmatprep.subr.mxu0 %v2201_v0  ;;  %2043 = vmatprep.subr.mxu1 %v2201_v0 }
 0x221   :  { %2007 = vmatpush3.msra.mxu0 %v1479_v19  ;;  %2044 = vmatpush3.msra.mxu1 %v1578_v20  ;;  %v1678_v19 = vld [vmem:[%s2667_s7 + $0x20] sm:$0xff]  ;;  %v1677_v20 = vld [vmem:[%s2667_s7 + $0x18] sm:$0xff] }
 0x222   :  { %2008 = vmatprep.subr.mxu0 %v2201_v0  ;;  %2045 = vmatprep.subr.mxu1 %v2201_v0 }
 0x223   :  { %2009 = vmatpush3.msra.mxu0 %v1478_v22  ;;  %2046 = vmatpush3.msra.mxu1 %v1577_v23  ;;  %v1675_v22 = vld [vmem:[%s2667_s7 + $0x8] sm:$0xff]  ;;  %v1674_v23 = vld [vmem:[%s2667_s7] sm:$0xff] }
 0x224   :  { %2010 = vmatprep.subr.mxu0 %v2201_v0  ;;  %2047 = vmatprep.subr.mxu1 %v2201_v0 }
 0x225   :  { %2011 = vmatpush3.msra.mxu0 %v1477_v7  ;;  %2048 = vmatpush3.msra.mxu1 %v1576_v24 }
 0x226   :  { %2012 = vmatprep.subr.mxu0 %v2201_v0  ;;  %2049 = vmatprep.subr.mxu1 %v2201_v0 }
 0x227   :  { %2013 = vmatpush3.msra.mxu0 %v1476_v27  ;;  %2050 = vmatpush3.msra.mxu1 %v1575_v2 }
 0x228   :  { %2014 = vmatprep.subr.mxu0 %v2201_v0  ;;  %2051 = vmatprep.subr.mxu1 %v2201_v0 }
 0x229   :  { %2015 = vmatpush3.msra.mxu0 %v1475_v28  ;;  %2052 = vmatpush3.msra.mxu1 %v1574_v15 }
 0x22a   :  { %2016 = vmatprep.subr.mxu0 %v2201_v0  ;;  %2053 = vmatprep.subr.mxu1 %v2201_v0 }
 0x22b   :  { %2017 = vmatpush3.msra.mxu0 %v1474_v31  ;;  %2054 = vmatpush3.msra.mxu1 %v1573_v32 }
 0x22c   :  { %2018 = vmatprep.subr.mxu0 %v2201_v0  ;;  %2055 = vmatprep.subr.mxu1 %v2201_v0 }
 0x22d   :  { %2019 = vmatpush3.msra.mxu0 %v1473_v35  ;;  %2056 = vmatpush3.msra.mxu1 %v1572_v36 }
 0x22e   :  { %2020 = vmatprep.subr.mxu0 %v2201_v0  ;;  %2057 = vmatprep.subr.mxu1 %v2201_v0 }
 0x22f   :  { %2021 = vmatpush3.msra.mxu0 %v1472_v39  ;;  %2058 = vmatpush3.msra.mxu1 %v1571_v40 }
 0x230   :  { %2022 = vmatprep.subr.mxu0 %v2201_v0  ;;  %2059 = vmatprep.subr.mxu1 %v2201_v0 }
 0x231   :  { %2023 = vmatpush3.msra.mxu0 %v1471_v41  ;;  %2060 = vmatpush3.msra.mxu1 %v1570_v42 }
 0x232   :  { %2024 = vmatprep.subr.mxu0 %v2201_v0  ;;  %2061 = vmatprep.subr.mxu1 %v2201_v0 }
 0x233   :  { %2025 = vmatpush3.msra.mxu0 %v1470_v45  ;;  %2062 = vmatpush3.msra.mxu1 %v1569_v46 }
 0x234   :  { %2026 = vmatprep.subr.mxu0 %v2201_v0  ;;  %2063 = vmatprep.subr.mxu1 %v2201_v0 }
 0x235   :  { %2027 = vmatpush3.msra.mxu0 %v1469_v50  ;;  %2064 = vmatpush3.msra.mxu1 %v1568_v51 }
 0x236   :  { %2028 = vmatprep.subr.mxu0 %v2201_v0  ;;  %2065 = vmatprep.subr.mxu1 %v2201_v0 }
 0x237   :  { %2029 = vmatpush3.msra.mxu0 %v1468_v54  ;;  %2066 = vmatpush3.msra.mxu1 %v1567_v55 }
 0x238   :  { %2030 = vmatprep.subr.mxu0 %v2201_v0  ;;  %2067 = vmatprep.subr.mxu1 %v2201_v0 }
 0x239   :  { %2031 = vmatpush3.msra.mxu0 %v1467_v58  ;;  %2068 = vmatpush3.msra.mxu1 %v1566_v59 }
 0x23a   :  { %2032 = vmatprep.subr.mxu0 %v2201_v0  ;;  %2070 = vmatmul.mubr.f32.vlgmr.msra.gmra.mxu1 %v1592_v3 }
 0x23b   :  { %2033 = vmatpush3.msra.mxu0 %v1466_v63  ;;  %2034 = vmatprep.mubr.msk.f32.mxu0 %vm2203_vm9, %v2201_v0 }
 0x23c   :  { %2035 = vmatmul.mubr.f32.vlgmr.msra.gmra.mxu0 %v1492_v5  ;;  %2072 = vmatprep.subr.mxu0 %v2201_v0 }
 0x23d   :  { %2104 = vmatprep.mubr.msk.f32.mxu0 %vm2203_vm9, %v2201_v0  ;;  %2073 = vmatpush3.msra.mxu0 %v1689_v6 }
 0x23e   :  { %2074 = vmatprep.subr.mxu0 %v2201_v0 }
 0x23f   :  { %2075 = vmatpush3.msra.mxu0 %v1688_v1 }
 0x240   :  { %2076 = vmatprep.subr.mxu0 %v2201_v0 }
 0x241   :  { %2077 = vmatpush3.msra.mxu0 %v1687_v8 }
 0x242   :  { %2078 = vmatprep.subr.mxu0 %v2201_v0 }
 0x243   :  { %2079 = vmatpush3.msra.mxu0 %v1686_v9 }
 0x244   :  { %2080 = vmatprep.subr.mxu0 %v2201_v0 }
 0x245   :  { %2081 = vmatpush3.msra.mxu0 %v1685_v11 }
 0x246   :  { %2082 = vmatprep.subr.mxu0 %v2201_v0 }
 0x247   :  { %2083 = vmatpush3.msra.mxu0 %v1684_v12 }
 0x248   :  { %2084 = vmatprep.subr.mxu0 %v2201_v0 }
 0x249   :  { %2085 = vmatpush3.msra.mxu0 %v1683_v13 }
 0x24a   :  { %2086 = vmatprep.subr.mxu0 %v2201_v0 }
 0x24b   :  { %2087 = vmatpush3.msra.mxu0 %v1682_v14 }
 0x24c   :  { %2088 = vmatprep.subr.mxu0 %v2201_v0 }
 0x24d   :  { %2089 = vmatpush3.msra.mxu0 %v1681_v16 }
 0x24e   :  { %2090 = vmatprep.subr.mxu0 %v2201_v0 }
 0x24f   :  { %2091 = vmatpush3.msra.mxu0 %v1680_v17 }
 0x250   :  { %2092 = vmatprep.subr.mxu0 %v2201_v0 }
 0x251   :  { %2093 = vmatpush3.msra.mxu0 %v1679_v18 }
 0x252   :  { %2094 = vmatprep.subr.mxu0 %v2201_v0 }
 0x253   :  { %2095 = vmatpush3.msra.mxu0 %v1678_v19 }
 0x254   :  { %2096 = vmatprep.subr.mxu0 %v2201_v0 }
 0x255   :  { %2097 = vmatpush3.msra.mxu0 %v1677_v20 }
 0x256   :  { %2098 = vmatprep.subr.mxu0 %v2201_v0 }
 0x257   :  { %2099 = vmatpush3.msra.mxu0 %v1676_v21 }
 0x258   :  { %2100 = vmatprep.subr.mxu0 %v2201_v0 }
 0x259   :  { %2101 = vmatpush3.msra.mxu0 %v1675_v22 }
 0x25a   :  { %2102 = vmatprep.subr.mxu0 %v2201_v0  ;;  %v1846_v0 = vld [vmem:[%s2668_s8] ss:$0 sm:$0xff] }
 0x25b   :  { %2103 = vmatpush3.msra.mxu0 %v1674_v23 }
 0x2da   :  { %v1461_v10 = vpop.f32.mrf.mxu1 }
 0x2dc   :  { %v1379_v7 = vpop.f32.mrf.mxu0  ;;  %v2001_v24 = vpop.f32.mrf.mxu1 }
 0x2dd   :  { %v1462_v2 = vadd.f32 %v1461_v10, %v1379_v7 }
 0x2de   :  { %v1966_v25 = vpop.f32.mrf.mxu0 }
 0x2fa   :  { %v1660_v27 = vpop.f32.mrf.mxu1 }
 0x2fc   :  { %v1560_v26 = vpop.f32.mrf.mxu0  ;;  %v2071_v28 = vpop.f32.mrf.mxu1 }
 0x2fd   :  { %v1564_v15 = vadd.f32 %v1560_v26, %v1462_v2 }
 0x2fe   :  { %v2036_v30 = vpop.f32.mrf.mxu0 }
 0x2ff   :  { %v1664_v31 = vadd.f32 %v1660_v27, %v1564_v15 }
 0x301   :  { %v1672_v32 = vadd.f32 %v1845_v29, %v1664_v31 }
 0x303   :  { %v1673_v33 = vmax.f32 %v1672_v32, 0.0 }
 0x305   :  { %2105 = vmatmul.mubr.f32.vlgmr.msra.gmra.mxu0 %v1673_v33 }
 0x3c5   :  { %v1763_v34 = vpop.f32.mrf.mxu0 }
 0x3c6   :  { %v1764_v35 = vadd.f32 %v1846_v0, %v1763_v34 }
 0x3c7   :  { %v2106_v36 = vpop.f32.mrf.mxu0 }
 0x3c8   :  { %1768 = vst.msk [vmem:[#allocation9] sm:$0x3] %vm1767_vm10, %v1764_v35 }
 0x3c9   :  { %2180 = shalt.err (!%p2177_p0)
}
 0x3ca   :  { %1778 = dma.vmem_to_hbm [thread:$0]  %s1776_s18, 32, %s2669_s9, [#allocation6]  }
 0x3cb   :  { %2193 = dma.done.wait [#allocation6], 32  }
 0x3cc   :  { %2194 = vsyncadd [#allocation6], 4294967264 }
 0x3cd   :  { %1782 = vsyncpa [#allocation5], 1 }
 0x3ce   :  { %1783 = vsyncpa [#allocation8], 1 }
 0x3cf   :  { %1784 = vsyncpa [#allocation6], 1 }

</bundles_post_ra>
